<compile_context>
chip_gen: v7x
topology: tpu7x:2x2x1
jax: 0.10.0
libtpu: 0.0.40
codegen_flags: <defaults>
</compile_context>

<pallas_src>
import functools

import jax
import jax.numpy as jnp
from jax.experimental import pallas as pl
from jax.experimental.pallas import tpu as pltpu


def _round_up(x, m):
    return ((x + m - 1) // m) * m


def _pad_dim(d, granule):
    # Leave already-lane-aligned dims alone; otherwise pad to the generation's
    # MXU-friendly granule (128 on v5e, 256 on v6e/v7x).
    if d % 128 == 0:
        return d
    return _round_up(d, max(granule, 128))


def _tpu_config():
    """(usable_vmem_bytes, pad_granule, bf16_elementwise) for this chip."""
    kind = ""
    try:
        kind = jax.devices()[0].device_kind.lower()
    except Exception:
        pass
    vmem_cap = None
    try:
        vmem_cap = int(pltpu.get_tpu_info().vmem_capacity_bytes)
    except Exception:
        vmem_cap = None
    if vmem_cap is None:
        vmem_cap = (64 << 20) if "v7" in kind else (128 << 20)

    old_gen = any(t in kind for t in ("v2", "v3", "v4", "v5"))
    if vmem_cap <= (64 << 20):
        # v7x-class: leave headroom for compiler-internal scratch.
        usable = max(vmem_cap - (12 << 20), 32 << 20)
    else:
        # v5e/v6e-class (128 MiB physical): use most of it.
        usable = min(vmem_cap - (24 << 20), 112 << 20)

    granule = 128 if old_gen else 256         # MXU pass width
    bf16_elementwise = not old_gen            # bf16 VPU/EUP on v6e/v7x only
    return usable, granule, bf16_elementwise


def _ffn_kernel(x_ref, w1t_ref, b1_ref, w2t_ref, b2_ref, o_ref, acc_ref, *,
                bf16_elementwise, approximate_gelu):
    # x_ref:   (Cp, tm)  input dtype (channels on sublanes, pixels on lanes)
    # w1t_ref: (th, Cp)  bf16        b1_ref: (th, 1) f32
    # w2t_ref: (Cp, th)  bf16        b2_ref: (Cp, 1) f32
    # o_ref:   (Cp, tm)              acc_ref: (Cp, tm) f32 scratch
    h_idx = pl.program_id(2)

    @pl.when(h_idx == 0)
    def _():
        acc_ref[...] = jnp.zeros_like(acc_ref)

    xb = x_ref[...].astype(jnp.bfloat16)                                 # (Cp, tm)
    pre = jnp.dot(w1t_ref[...], xb, preferred_element_type=jnp.float32)  # (th, tm)

    if bf16_elementwise and approximate_gelu:
        # v6e/v7x: packed bf16 VPU add + bf16 tanh GELU on the EUP.
        act = jax.nn.gelu(
            pre.astype(jnp.bfloat16) + b1_ref[...].astype(jnp.bfloat16),
            approximate=True)
    else:
        # v5e (no bf16 VPU/EUP) or exact-erf GELU request: stay in f32.
        act = jax.nn.gelu(pre + b1_ref[...], approximate=approximate_gelu)
        act = act.astype(jnp.bfloat16)

    acc_ref[...] += jnp.dot(w2t_ref[...], act,
                            preferred_element_type=jnp.float32)          # (Cp, tm)

    @pl.when(h_idx == pl.num_programs(2) - 1)
    def _():
        o_ref[...] = (acc_ref[...] + b2_ref[...]).astype(o_ref.dtype)


@functools.partial(jax.jit, static_argnames=("tm", "approximate_gelu"))
def feed_forward(x_nchw, w1, b1, w2, b2, *, tm=512, approximate_gelu=True):
    """x_nchw: (B, dim, H, W); w1: (dim, hidden); b1: (hidden,);
    w2: (hidden, dim); b2: (dim,).  Returns (B, dim, H, W) in x's dtype."""
    B, C, H, W = x_nchw.shape
    hidden = w1.shape[1]
    HW = H * W
    out_dtype = x_nchw.dtype

    usable_vmem, granule, bf16_ew = _tpu_config()

    Cp = _pad_dim(C, granule)
    Hp0 = _pad_dim(hidden, granule)

    x_item = jnp.dtype(x_nchw.dtype).itemsize
    out_item = jnp.dtype(out_dtype).itemsize

    # Pixel tile (lanes): default 512, shrunk to the spatial extent if smaller.
    tm_eff = min(tm, _round_up(HW, 128))
    tm_eff = max(128, (tm_eff // 128) * 128)

    def _vmem_estimate(tm_, th_):
        n_h_ = -(-Hp0 // th_)
        wbuf = 1 if n_h_ == 1 else 2          # single-buffer invariant weights
        return (2 * Cp * tm_ * x_item         # x tiles (double-buffered)
                + 2 * Cp * tm_ * out_item     # out tiles (double-buffered)
                + wbuf * 2 * th_ * Cp * 2     # W1^T + W2^T chunks (bf16)
                + wbuf * th_ * 4 + Cp * 4     # biases
                + Cp * tm_ * 4                # f32 accumulator scratch
                + th_ * tm_ * 4)              # intermediate activations

    # Pick the hidden chunk (and, if still needed, shrink the pixel tile) so
    # the working set fits this generation's VMEM budget.
    th = Hp0
    while _vmem_estimate(tm_eff, th) + (4 << 20) > usable_vmem:
        if th > granule:
            th = max(granule, ((th // 2) // granule) * granule)
        elif tm_eff > 128:
            tm_eff = max(128, ((tm_eff // 2) // 128) * 128)
        else:
            break

    Hp = _round_up(Hp0, th)       # padded hidden rows/cols are zero => exact
    n_h = Hp // th
    HWp = _round_up(HW, tm_eff)
    n_m = HWp // tm_eff

    # --- operand prep (no NCHW<->NHWC transpose; pads are no-ops when aligned)
    x3 = x_nchw.reshape(B, C, HW)
    if Cp != C or HWp != HW:
        x3 = jnp.pad(x3, ((0, 0), (0, Cp - C), (0, HWp - HW)))

    w1t = jnp.pad(jnp.transpose(w1),
                  ((0, Hp - hidden), (0, Cp - C))).astype(jnp.bfloat16)   # (Hp, Cp)
    w2t = jnp.pad(jnp.transpose(w2),
                  ((0, Cp - C), (0, Hp - hidden))).astype(jnp.bfloat16)   # (Cp, Hp)
    b1p = jnp.pad(b1, (0, Hp - hidden)).reshape(Hp, 1).astype(jnp.float32)
    b2p = jnp.pad(b2, (0, Cp - C)).reshape(Cp, 1).astype(jnp.float32)

    est = _vmem_estimate(tm_eff, th)
    vmem_limit = int(min(usable_vmem, max(est + (8 << 20), 32 << 20)))

    flops = 4 * B * HWp * Cp * Hp                     # two matmuls, 2*M*K*N each
    transc = B * HWp * Hp                             # one tanh per hidden activation
    bytes_acc = (B * HWp * Cp * (x_item + out_item)
                 + 2 * Cp * Hp * 2 + (Hp + Cp) * 4)
    cost = pl.CostEstimate(flops=int(flops), transcendentals=int(transc),
                           bytes_accessed=int(bytes_acc))

    invariant_w = (n_h == 1)

    def _wspec(shape, imap, invariant):
        if invariant:
            return pl.BlockSpec(shape, imap, pipeline_mode=pl.Buffered(1))
        return pl.BlockSpec(shape, imap)

    kern = functools.partial(_ffn_kernel,
                             bf16_elementwise=bf16_ew,
                             approximate_gelu=approximate_gelu)

    out3 = pl.pallas_call(
        kern,
        out_shape=jax.ShapeDtypeStruct((B, Cp, HWp), out_dtype),
        grid_spec=pltpu.PrefetchScalarGridSpec(
            num_scalar_prefetch=0,
            grid=(B, n_m, n_h),
            in_specs=[
                pl.BlockSpec((pl.Squeezed(), Cp, tm_eff),
                             lambda b, i, h: (b, 0, i)),                 # x slab
                _wspec((th, Cp), lambda b, i, h: (h, 0), invariant_w),   # W1^T
                _wspec((th, 1), lambda b, i, h: (h, 0), invariant_w),    # b1
                _wspec((Cp, th), lambda b, i, h: (0, h), invariant_w),   # W2^T
                _wspec((Cp, 1), lambda b, i, h: (0, 0), True),           # b2
            ],
            out_specs=pl.BlockSpec((pl.Squeezed(), Cp, tm_eff),
                                   lambda b, i, h: (b, 0, i)),
            scratch_shapes=[pltpu.VMEM((Cp, tm_eff), jnp.float32)],
        ),
        compiler_params=pltpu.CompilerParams(
            dimension_semantics=("parallel", "parallel", "arbitrary"),
            vmem_limit_bytes=vmem_limit,
        ),
        cost_estimate=cost,
    )(x3, w1t, b1p, w2t, b2p)

    out3 = out3[:, :C, :HW]
    return out3.reshape(B, C, H, W)


if __name__ == "__main__":
    # Small shapes consistent with the module: batch=2, dim=4, spatial=16x16.
    B, dim, H, W = 2, 4, 16, 16
    mlp_mult = 4
    hidden = dim * mlp_mult

    key = jax.random.PRNGKey(0)
    kx, k1, k2, k3, k4 = jax.random.split(key, 5)

    x = jax.random.normal(kx, (B, dim, H, W), dtype=jnp.float32)

    # Conv2d(dim, hidden, 1).weight is (hidden, dim, 1, 1); stored here as
    # (dim, hidden) so that y = x_pix @ W1 + b1 matches the conv exactly.
    w1 = jax.random.normal(k1, (dim, hidden), dtype=jnp.float32) * 0.1
    b1 = jax.random.normal(k2, (hidden,), dtype=jnp.float32) * 0.1
    w2 = jax.random.normal(k3, (hidden, dim), dtype=jnp.float32) * 0.1
    b2 = jax.random.normal(k4, (dim,), dtype=jnp.float32) * 0.1

    out = feed_forward(x, w1, b1, w2, b2)
    out = jax.block_until_ready(out)
    assert out.shape == (B, dim, H, W)

    # Reference #1: mirrors the kernel math (bf16 matmul inputs, tanh GELU,
    # f32 accumulation).  Tolerance allows the bf16 bias/GELU path on v6e/v7x.
    x2d = jnp.transpose(x, (0, 2, 3, 1)).reshape(-1, dim)
    hmid = jnp.dot(x2d.astype(jnp.bfloat16), w1.astype(jnp.bfloat16),
                   preferred_element_type=jnp.float32) + b1
    hmid = jax.nn.gelu(hmid, approximate=True)
    ref2d = jnp.dot(hmid.astype(jnp.bfloat16), w2.astype(jnp.bfloat16),
                    preferred_element_type=jnp.float32) + b2
    ref = jnp.transpose(ref2d.reshape(B, H, W, dim), (0, 3, 1, 2))
    err = float(jnp.max(jnp.abs(out - ref)))
    assert err < 1e-2, err

    # Reference #2: loose check against the exact f32 module semantics
    # (erf GELU, f32 matmul) — bf16 + tanh GELU stay well inside this band.
    ref_f2d = jax.nn.gelu(x2d @ w1 + b1, approximate=False) @ w2 + b2
    ref_f = jnp.transpose(ref_f2d.reshape(B, H, W, dim), (0, 3, 1, 2))
    assert jnp.allclose(out, ref_f, atol=5e-2, rtol=5e-2)

    print("KERNEL_OK")
</pallas_src>

<mosaic_0001>
module attributes {stable_mosaic.version = 11 : i64} {
  func.func @_ffn_kernel(%arg0: i32, %arg1: i32, %arg2: i32, %arg3: memref<1x256x256xf32, #tpu.memory_space<vmem>>, %arg4: memref<256x256xbf16, #tpu.memory_space<vmem>>, %arg5: memref<256x1xf32, #tpu.memory_space<vmem>>, %arg6: memref<256x256xbf16, #tpu.memory_space<vmem>>, %arg7: memref<256x1xf32, #tpu.memory_space<vmem>>, %arg8: memref<1x256x256xf32, #tpu.memory_space<vmem>>, %arg9: memref<256x256xf32, #tpu.memory_space<vmem>>) attributes {dimension_semantics = [#tpu.dimension_semantics<parallel>, #tpu.dimension_semantics<parallel>, #tpu.dimension_semantics<arbitrary>], iteration_bounds = array<i64: 2, 1, 1>, scalar_prefetch = 0 : i64, scratch_operands = 1 : i64, tpu.core_type = #tpu.core_type<tc>, window_params = [{transform_indices = @transform_0, window_bounds = array<i64: 1, 256, 256>}, {pipeline_mode = #tpu.pipeline_mode<synchronous>, transform_indices = @transform_1, window_bounds = array<i64: 256, 256>}, {pipeline_mode = #tpu.pipeline_mode<synchronous>, transform_indices = @transform_2, window_bounds = array<i64: 256, 1>}, {pipeline_mode = #tpu.pipeline_mode<synchronous>, transform_indices = @transform_3, window_bounds = array<i64: 256, 256>}, {pipeline_mode = #tpu.pipeline_mode<synchronous>, transform_indices = @transform_4, window_bounds = array<i64: 256, 1>}, {transform_indices = @transform_5, window_bounds = array<i64: 1, 256, 256>}]} {
    %c0_i32 = arith.constant 0 : i32
    %0 = arith.cmpi eq, %arg2, %c0_i32 : i32
    %1 = arith.extui %0 : i1 to i32
    %c0_i32_0 = arith.constant 0 : i32
    %2 = arith.cmpi ne, %1, %c0_i32_0 : i32
    scf.if %2 {
      %cst_20 = arith.constant 0.000000e+00 : f32
      %34 = vector.broadcast %cst_20 : f32 to vector<256x256xf32>
      %c0_21 = arith.constant 0 : index
      %c0_22 = arith.constant 0 : index
      %35 = vector.load %arg9[%c0_21, %c0_22] : memref<256x256xf32, #tpu.memory_space<vmem>>, vector<256x256xf32>
      tpu.vector_store %arg9[%c0_21, %c0_22], %34 {strides = array<i32>} : memref<256x256xf32, #tpu.memory_space<vmem>>, vector<256x256xf32>,
    } else {
    }
    %c0 = arith.constant 0 : index
    %c0_1 = arith.constant 0 : index
    %c0_2 = arith.constant 0 : index
    %3 = vector.load %arg3[%c0, %c0_1, %c0_2] : memref<1x256x256xf32, #tpu.memory_space<vmem>>, vector<1x256x256xf32>
    %4 = vector.shape_cast %3 : vector<1x256x256xf32> to vector<256x256xf32>
    %5 = arith.truncf %4 : vector<256x256xf32> to vector<256x256xbf16>
    %c0_3 = arith.constant 0 : index
    %c0_4 = arith.constant 0 : index
    %6 = vector.load %arg4[%c0_3, %c0_4] : memref<256x256xbf16, #tpu.memory_space<vmem>>, vector<256x256xbf16>
    %cst = arith.constant dense<0.000000e+00> : vector<256x256xf32>
    %7 = tpu.matmul %6, %5, %cst {dimension_numbers = #tpu.dot_dimension_numbers<[1], [0], [0], [1], [0, 0, 1, 1], [], []>} : vector<256x256xbf16>, vector<256x256xbf16>, vector<256x256xf32> -> vector<256x256xf32>
    %8 = arith.truncf %7 : vector<256x256xf32> to vector<256x256xbf16>
    %c0_5 = arith.constant 0 : index
    %c0_6 = arith.constant 0 : index
    %9 = vector.load %arg5[%c0_5, %c0_6] : memref<256x1xf32, #tpu.memory_space<vmem>>, vector<256x1xf32>
    %10 = arith.truncf %9 : vector<256x1xf32> to vector<256x1xbf16>
    %11 = vector.broadcast %10 : vector<256x1xbf16> to vector<256x256xbf16>
    %12 = arith.addf %8, %11 : vector<256x256xbf16>
    %13 = arith.mulf %12, %12 : vector<256x256xbf16>
    %14 = arith.mulf %12, %13 : vector<256x256xbf16>
    %cst_7 = arith.constant 4.467770e-02 : bf16
    %15 = vector.broadcast %cst_7 : bf16 to vector<256x256xbf16>
    %16 = arith.mulf %15, %14 : vector<256x256xbf16>
    %17 = arith.addf %12, %16 : vector<256x256xbf16>
    %cst_8 = arith.constant 7.968750e-01 : bf16
    %18 = vector.broadcast %cst_8 : bf16 to vector<256x256xbf16>
    %19 = arith.mulf %18, %17 : vector<256x256xbf16>
    %20 = math.tanh %19 : vector<256x256xbf16>
    %cst_9 = arith.constant 1.000000e+00 : bf16
    %21 = vector.broadcast %cst_9 : bf16 to vector<256x256xbf16>
    %22 = arith.addf %21, %20 : vector<256x256xbf16>
    %cst_10 = arith.constant 5.000000e-01 : bf16
    %23 = vector.broadcast %cst_10 : bf16 to vector<256x256xbf16>
    %24 = arith.mulf %23, %22 : vector<256x256xbf16>
    %25 = arith.mulf %12, %24 : vector<256x256xbf16>
    %c0_11 = arith.constant 0 : index
    %c0_12 = arith.constant 0 : index
    %26 = vector.load %arg9[%c0_11, %c0_12] : memref<256x256xf32, #tpu.memory_space<vmem>>, vector<256x256xf32>
    %c0_13 = arith.constant 0 : index
    %c0_14 = arith.constant 0 : index
    %27 = vector.load %arg6[%c0_13, %c0_14] : memref<256x256xbf16, #tpu.memory_space<vmem>>, vector<256x256xbf16>
    %cst_15 = arith.constant dense<0.000000e+00> : vector<256x256xf32>
    %28 = tpu.matmul %27, %25, %cst_15 {dimension_numbers = #tpu.dot_dimension_numbers<[1], [0], [0], [1], [0, 0, 1, 1], [], []>} : vector<256x256xbf16>, vector<256x256xbf16>, vector<256x256xf32> -> vector<256x256xf32>
    %29 = arith.addf %26, %28 : vector<256x256xf32>
    %c0_16 = arith.constant 0 : index
    %c0_17 = arith.constant 0 : index
    %30 = vector.load %arg9[%c0_16, %c0_17] : memref<256x256xf32, #tpu.memory_space<vmem>>, vector<256x256xf32>
    tpu.vector_store %arg9[%c0_16, %c0_17], %29 {strides = array<i32>} : memref<256x256xf32, #tpu.memory_space<vmem>>, vector<256x256xf32>,
    %c0_i32_18 = arith.constant 0 : i32
    %31 = arith.cmpi eq, %arg2, %c0_i32_18 : i32
    %32 = arith.extui %31 : i1 to i32
    %c0_i32_19 = arith.constant 0 : i32
    %33 = arith.cmpi ne, %32, %c0_i32_19 : i32
    scf.if %33 {
      %c0_20 = arith.constant 0 : index
      %c0_21 = arith.constant 0 : index
      %34 = vector.load %arg9[%c0_20, %c0_21] : memref<256x256xf32, #tpu.memory_space<vmem>>, vector<256x256xf32>
      %c0_22 = arith.constant 0 : index
      %c0_23 = arith.constant 0 : index
      %35 = vector.load %arg7[%c0_22, %c0_23] : memref<256x1xf32, #tpu.memory_space<vmem>>, vector<256x1xf32>
      %36 = vector.broadcast %35 : vector<256x1xf32> to vector<256x256xf32>
      %37 = arith.addf %34, %36 : vector<256x256xf32>
      %c0_24 = arith.constant 0 : index
      %c0_25 = arith.constant 0 : index
      %c0_26 = arith.constant 0 : index
      %38 = vector.load %arg8[%c0_24, %c0_25, %c0_26] : memref<1x256x256xf32, #tpu.memory_space<vmem>>, vector<1x256x256xf32>
      %39 = vector.shape_cast %38 : vector<1x256x256xf32> to vector<256x256xf32>
      %40 = vector.shape_cast %37 : vector<256x256xf32> to vector<1x256x256xf32>
      tpu.vector_store %arg8[%c0_24, %c0_25, %c0_26], %40 {strides = array<i32>} : memref<1x256x256xf32, #tpu.memory_space<vmem>>, vector<1x256x256xf32>,
    } else {
    }
    return
  }
  func.func @transform_0(%arg0: i32, %arg1: i32, %arg2: i32) -> (i32, i32, i32) {
    %c0_i32 = arith.constant 0 : i32
    %c0_i32_0 = arith.constant 0 : i32
    return %arg0, %c0_i32, %arg1 : i32, i32, i32
  }
  func.func @transform_1(%arg0: i32, %arg1: i32, %arg2: i32) -> (i32, i32) {
    %c0_i32 = arith.constant 0 : i32
    %c0_i32_0 = arith.constant 0 : i32
    return %arg2, %c0_i32 : i32, i32
  }
  func.func @transform_2(%arg0: i32, %arg1: i32, %arg2: i32) -> (i32, i32) {
    %c0_i32 = arith.constant 0 : i32
    %c0_i32_0 = arith.constant 0 : i32
    return %arg2, %c0_i32 : i32, i32
  }
  func.func @transform_3(%arg0: i32, %arg1: i32, %arg2: i32) -> (i32, i32) {
    %c0_i32 = arith.constant 0 : i32
    %c0_i32_0 = arith.constant 0 : i32
    return %c0_i32, %arg2 : i32, i32
  }
  func.func @transform_4(%arg0: i32, %arg1: i32, %arg2: i32) -> (i32, i32) {
    %c0_i32 = arith.constant 0 : i32
    %c0_i32_0 = arith.constant 0 : i32
    %c0_i32_1 = arith.constant 0 : i32
    return %c0_i32, %c0_i32_0 : i32, i32
  }
  func.func @transform_5(%arg0: i32, %arg1: i32, %arg2: i32) -> (i32, i32, i32) {
    %c0_i32 = arith.constant 0 : i32
    %c0_i32_0 = arith.constant 0 : i32
    return %arg0, %c0_i32, %arg1 : i32, i32, i32
  }
}

</mosaic_0001>

<bundles_post_ra>
// kernel: feed_forward.1
= control target key start
LH: loop header
LB: loop body
LE: loop exit
PB: predicated region body
PF: predicated region fallthrough
CT: control target
= control target key end

     0   :  { %s2794_s18 = smov 0   ;;  %s2796_s19 = smov 0   ;;  %s3560_s0 = inlined_call_operand.vmem [shape: f32[2,256,256], index: 0, kind: input, shape index: {}]   ;;  %s3561_s1 = inlined_call_operand.vmem [shape: bf16[256,256], index: 1, kind: input, shape index: {}]   ;;  %s3562_s2 = inlined_call_operand.vmem [shape: f32[256,1], index: 2, kind: input, shape index: {}]   ;;  %s3563_s3 = inlined_call_operand.vmem [shape: bf16[256,256], index: 3, kind: input, shape index: {}]   ;;  %s3564_s4 = inlined_call_operand.vmem [shape: f32[256,1], index: 4, kind: input, shape index: {}]   ;;  %s3565_s5 = inlined_call_operand.vmem [shape: f32[2,256,256], index: 5, kind: output, shape index: {}]  }
   0x1   :  { %s2798_s20 = smov 0  }
   0x2 LB: > { %s34_s21 = sadd.s32 1, %s2757_s19  ;;  %p2479_p0 = scmp.ge.s32.totalorder %s2761_s20, 1  ;;  %s2761_s20 = sphi %s2798_s20, %s15_s20   ;;  %s2757_s19 = sphi %s2796_s19, %s3567_s19   ;;  %s2753_s18 = sphi %s2794_s18, %s3566_s18  }
   0x3   : > { %p36_p1 = scmp.ge.s32.totalorder %s34_s21, 2  ;;  %p249_p2 = scmp.lt.s32.totalorder %s2761_s20, 3 }
   0x5   : > { %s3569_s21 = smov (%p36_p1, %s34_s21), 0  ;;  %p250_p3 = pnand %p2479_p0, %p249_p2 }
   0x6   : > { %p302_p4 = scmp.lt.s32.totalorder (!%p250_p3), %s2753_s18, 1  ;;  %v2581_v0 = vld [vmem:[%s3561_s1 + $0x4] ss:$8 sps:$4 sm:$0xff] (!%p250_p3)   ;;  %v2763_v1 = vmov (!%p250_p3), 0   ;;  %v927_v53 = vld [vmem:[%s3562_s2 + $0x10] sm:$0xff] (!%p250_p3)  ;;  %v928_v56 = vld [vmem:[%s3562_s2 + $0x18] sm:$0xff] (!%p250_p3) }
   0x7   : > { %253 = sbr.rel (%p250_p3) target bundleno = 793 (0x319), region = 40  ;;  %2577 = vset.pattern.permute.xlu0 (!%p250_p3), %v2763_v1  ;;  %2578 = vset.pattern.permute.xlu1 (!%p250_p3), %v2763_v1  ;;  %v925_v51 = vld [vmem:[%s3562_s2] sm:$0xff] (!%p250_p3)  ;;  %v926_v52 = vld [vmem:[%s3562_s2 + $0x8] sm:$0xff] (!%p250_p3)  ;;  %v958_v63 = vpack.c.bf16 (!%p250_p3), %v928_v56, %v927_v53 }
   0x8   : > { %732 = vmatprep.mubr.bf16.mxu0 (!%p250_p3), %v2581_v0  ;;  %v957_v55 = vpack.c.bf16 (!%p250_p3), %v926_v52, %v925_v51  ;;  %v929_v60 = vld [vmem:[%s3562_s2 + $0x20] sm:$0xff] (!%p250_p3)  ;;  %v930_v0 = vld [vmem:[%s3562_s2 + $0x28] sm:$0xff] (!%p250_p3) }
   0x9   : > { %v933_v1 = vld [vmem:[%s3562_s2 + $0x40] sm:$0xff] (!%p250_p3)  ;;  %v950_v53 = vld [vmem:[%s3562_s2 + $0xc8] sm:$0xff] (!%p250_p3) }
   0xa   : > { %975 = vperm.xlu0 (!%p250_p3), %2577, %v957_v55   ;;  %v949_v52 = vld [vmem:[%s3562_s2 + $0xc0] sm:$0xff] (!%p250_p3) }
   0xe   : > { %s3571_s18 = smov (!%p302_p4, %s2753_s18), 1  ;;  %980 = vperm.xlu0 %2577, %v958_v63  }
   0xf   : > { %s2550_s24 = sshll.u32 %s3571_s18, 9 }
  0x10   : > { %s2823_s27 = scalar_lea.vmem %s3560_s0, %s2550_s24  ;;  %s3485_s26 = scalar_lea.vmem %s3565_s5, %s2550_s24 }
  0x11   : > { %v413_v2 = vld [vmem:[%s2823_s27 + $0x8] sm:$0xff]  ;;  %v415_v3 = vld [vmem:[%s2823_s27 + $0x18] sm:$0xff]  ;;  %v412_v4 = vld [vmem:[%s2823_s27] sm:$0xff] }
  0x12   : > { %v477_v5 = vpack.c.bf16 %v415_v3, %v413_v2  ;;  %v414_v6 = vld [vmem:[%s2823_s27 + $0x10] sm:$0xff]  ;;  %v417_v7 = vld [vmem:[%s2823_s27 + $0x28] sm:$0xff]  ;;  %v419_v8 = vld [vmem:[%s2823_s27 + $0x38] sm:$0xff]  ;;  %v959_v2 = vpack.c.bf16 %v930_v0, %v929_v60  ;;  %v969_v0 = vpack.c.bf16 %v950_v53, %v949_v52 }
  0x13   : > { %v476_v9 = vpack.c.bf16 %v414_v6, %v412_v4  ;;  %v479_v10 = vpack.c.bf16 %v419_v8, %v417_v7  ;;  %v416_v11 = vld [vmem:[%s2823_s27 + $0x20] sm:$0xff]  ;;  %v418_v12 = vld [vmem:[%s2823_s27 + $0x30] sm:$0xff]  ;;  %v421_v13 = vld [vmem:[%s2823_s27 + $0x48] sm:$0xff] }
  0x14   : > { %700 = vmatprep.subr.bf16.mxu0 %v477_v5  ;;  %v423_v14 = vld [vmem:[%s2823_s27 + $0x58] sm:$0xff]  ;;  %v478_v15 = vpack.c.bf16 %v418_v12, %v416_v11  ;;  %v420_v17 = vld [vmem:[%s2823_s27 + $0x40] sm:$0xff]  ;;  %v422_v18 = vld [vmem:[%s2823_s27 + $0x50] sm:$0xff]  ;;  %985 = vperm.xlu1 %2578, %v959_v2  }
  0x15   : > { %701 = vmatpush1.bf16.msra.mxu0 %v476_v9  ;;  %v481_v16 = vpack.c.bf16 %v423_v14, %v421_v13  ;;  %v425_v19 = vld [vmem:[%s2823_s27 + $0x68] sm:$0xff]  ;;  %v427_v20 = vld [vmem:[%s2823_s27 + $0x78] sm:$0xff]  ;;  %v480_v21 = vpack.c.bf16 %v422_v18, %v420_v17  ;;  %v424_v23 = vld [vmem:[%s2823_s27 + $0x60] sm:$0xff] }
  0x16   : > { %702 = vmatprep.subr.bf16.mxu0 %v479_v10  ;;  %v483_v22 = vpack.c.bf16 %v427_v20, %v425_v19  ;;  %v426_v24 = vld [vmem:[%s2823_s27 + $0x70] sm:$0xff]  ;;  %v429_v25 = vld [vmem:[%s2823_s27 + $0x88] sm:$0xff]  ;;  %v431_v26 = vld [vmem:[%s2823_s27 + $0x98] sm:$0xff] }
  0x17   : > { %v482_v27 = vpack.c.bf16 %v426_v24, %v424_v23  ;;  %v485_v28 = vpack.c.bf16 %v431_v26, %v429_v25  ;;  %v428_v29 = vld [vmem:[%s2823_s27 + $0x80] sm:$0xff]  ;;  %v430_v30 = vld [vmem:[%s2823_s27 + $0x90] sm:$0xff]  ;;  %v433_v31 = vld [vmem:[%s2823_s27 + $0xa8] sm:$0xff] }
  0x18   : > { %v435_v32 = vld [vmem:[%s2823_s27 + $0xb8] sm:$0xff]  ;;  %v484_v33 = vpack.c.bf16 %v430_v30, %v428_v29  ;;  %v432_v35 = vld [vmem:[%s2823_s27 + $0xa0] sm:$0xff]  ;;  %v434_v36 = vld [vmem:[%s2823_s27 + $0xb0] sm:$0xff] }
  0x19   : > { %703 = vmatpush1.bf16.msra.mxu0 %v478_v15  ;;  %v487_v34 = vpack.c.bf16 %v435_v32, %v433_v31  ;;  %v437_v37 = vld [vmem:[%s2823_s27 + $0xc8] sm:$0xff]  ;;  %v439_v38 = vld [vmem:[%s2823_s27 + $0xd8] sm:$0xff]  ;;  %v486_v39 = vpack.c.bf16 %v434_v36, %v432_v35  ;;  %v436_v41 = vld [vmem:[%s2823_s27 + $0xc0] sm:$0xff] }
  0x1a   : > { %704 = vmatprep.subr.bf16.mxu0 %v481_v16  ;;  %v489_v40 = vpack.c.bf16 %v439_v38, %v437_v37  ;;  %v438_v42 = vld [vmem:[%s2823_s27 + $0xd0] sm:$0xff]  ;;  %v441_v43 = vld [vmem:[%s2823_s27 + $0xe8] sm:$0xff]  ;;  %v443_v44 = vld [vmem:[%s2823_s27 + $0xf8] sm:$0xff] }
  0x1b   : > { %v488_v45 = vpack.c.bf16 %v438_v42, %v436_v41  ;;  %v440_v46 = vld [vmem:[%s2823_s27 + $0xe0] sm:$0xff]  ;;  %v442_v47 = vld [vmem:[%s2823_s27 + $0xf0] sm:$0xff]  ;;  %v491_v48 = vpack.c.bf16 %v443_v44, %v441_v43  ;;  %v445_v49 = vld [vmem:[%s2823_s27 + $0x108] sm:$0xff] }
  0x1c   : > { %v447_v50 = vld [vmem:[%s2823_s27 + $0x118] sm:$0xff]  ;;  %v444_v54 = vld [vmem:[%s2823_s27 + $0x100] sm:$0xff]  ;;  %v490_v57 = vpack.c.bf16 %v442_v47, %v440_v46  ;;  %v446_v58 = vld [vmem:[%s2823_s27 + $0x110] sm:$0xff] }
  0x1d   : > { %705 = vmatpush1.bf16.msra.mxu0 %v480_v21  ;;  %v449_v59 = vld [vmem:[%s2823_s27 + $0x128] sm:$0xff]  ;;  %v493_v61 = vpack.c.bf16 %v447_v50, %v445_v49  ;;  %v451_v62 = vld [vmem:[%s2823_s27 + $0x138] sm:$0xff]  ;;  %v931_v4 = vld [vmem:[%s3562_s2 + $0x30] sm:$0xff]  ;;  %v492_v6 = vpack.c.bf16 %v446_v58, %v444_v54 }
  0x1e   : > { %706 = vmatprep.subr.bf16.mxu0 %v483_v22  ;;  %v934_v3 = vld [vmem:[%s3562_s2 + $0x48] sm:$0xff]  ;;  %v932_v5 = vld [vmem:[%s3562_s2 + $0x38] sm:$0xff]  ;;  %v448_v7 = vld [vmem:[%s2823_s27 + $0x120] sm:$0xff]  ;;  %v495_v10 = vpack.c.bf16 %v451_v62, %v449_v59 }
  0x1f   : > { %v450_v8 = vld [vmem:[%s2823_s27 + $0x130] sm:$0xff]  ;;  %v960_v9 = vpack.c.bf16 %v932_v5, %v931_v4  ;;  %v453_v11 = vld [vmem:[%s2823_s27 + $0x148] sm:$0xff]  ;;  %v961_v12 = vpack.c.bf16 %v934_v3, %v933_v1  ;;  %v936_v14 = vld [vmem:[%s3562_s2 + $0x58] sm:$0xff] }
  0x20   : > { %v935_v13 = vld [vmem:[%s3562_s2 + $0x50] sm:$0xff]  ;;  %v455_v15 = vld [vmem:[%s2823_s27 + $0x158] sm:$0xff]  ;;  %v937_v16 = vld [vmem:[%s3562_s2 + $0x60] sm:$0xff]  ;;  %v494_v18 = vpack.c.bf16 %v450_v8, %v448_v7 }
  0x21   : > { %707 = vmatpush1.bf16.msra.mxu0 %v482_v27  ;;  %v938_v17 = vld [vmem:[%s3562_s2 + $0x68] sm:$0xff]  ;;  %v452_v19 = vld [vmem:[%s2823_s27 + $0x140] sm:$0xff]  ;;  %v454_v20 = vld [vmem:[%s2823_s27 + $0x150] sm:$0xff]  ;;  %990 = vperm.xlu1 %2578, %v960_v9   ;;  %v962_v21 = vpack.c.bf16 %v936_v14, %v935_v13  ;;  %v497_v22 = vpack.c.bf16 %v455_v15, %v453_v11 }
  0x22   : > { %708 = vmatprep.subr.bf16.mxu0 %v485_v28  ;;  %v457_v23 = vld [vmem:[%s2823_s27 + $0x168] sm:$0xff]  ;;  %995 = vperm.xlu0 %2577, %v961_v12   ;;  %v963_v24 = vpack.c.bf16 %v938_v17, %v937_v16  ;;  %v939_v25 = vld [vmem:[%s3562_s2 + $0x70] sm:$0xff]  ;;  %v940_v26 = vld [vmem:[%s3562_s2 + $0x78] sm:$0xff]  ;;  %v496_v30 = vpack.c.bf16 %v454_v20, %v452_v19 }
  0x23   : > { %v459_v27 = vld [vmem:[%s2823_s27 + $0x178] sm:$0xff]  ;;  %v941_v28 = vld [vmem:[%s3562_s2 + $0x80] sm:$0xff]  ;;  %v942_v29 = vld [vmem:[%s3562_s2 + $0x88] sm:$0xff] }
  0x24   : > { %v456_v31 = vld [vmem:[%s2823_s27 + $0x160] sm:$0xff]  ;;  %v458_v32 = vld [vmem:[%s2823_s27 + $0x170] sm:$0xff]  ;;  %v499_v35 = vpack.c.bf16 %v459_v27, %v457_v23  ;;  %v463_v36 = vld [vmem:[%s2823_s27 + $0x198] sm:$0xff]  ;;  %v965_v37 = vpack.c.bf16 %v942_v29, %v941_v28 }
  0x25   : > { %709 = vmatpush1.bf16.msra.mxu0 %v484_v33  ;;  %v461_v33 = vld [vmem:[%s2823_s27 + $0x188] sm:$0xff]  ;;  %1000 = vperm.xlu1 %2578, %v962_v21   ;;  %v943_v38 = vld [vmem:[%s3562_s2 + $0x90] sm:$0xff]  ;;  %v460_v42 = vld [vmem:[%s2823_s27 + $0x180] sm:$0xff]  ;;  %v498_v43 = vpack.c.bf16 %v458_v32, %v456_v31 }
  0x26   : > { %710 = vmatprep.subr.bf16.mxu0 %v487_v34  ;;  %v964_v34 = vpack.c.bf16 %v940_v26, %v939_v25  ;;  %1005 = vperm.xlu0 %2577, %v963_v24   ;;  %v946_v41 = vld [vmem:[%s3562_s2 + $0xa8] sm:$0xff]  ;;  %v462_v44 = vld [vmem:[%s2823_s27 + $0x190] sm:$0xff]  ;;  %v948_v50 = vld [vmem:[%s3562_s2 + $0xb8] sm:$0xff] }
  0x27   : > { %v947_v47 = vld [vmem:[%s3562_s2 + $0xb0] sm:$0xff]  ;;  %v467_v51 = vld [vmem:[%s2823_s27 + $0x1b8] sm:$0xff]  ;;  %v464_v54 = vld [vmem:[%s2823_s27 + $0x1a0] sm:$0xff]  ;;  %v500_v56 = vpack.c.bf16 %v462_v44, %v460_v42 }
  0x28   : > { %v466_v55 = vld [vmem:[%s2823_s27 + $0x1b0] sm:$0xff]  ;;  %v471_v58 = vld [vmem:[%s2823_s27 + $0x1d8] sm:$0xff]  ;;  %v968_v59 = vpack.c.bf16 %v948_v50, %v947_v47  ;;  %v953_v60 = vld [vmem:[%s3562_s2 + $0xe0] sm:$0xff] }
  0x29   : > { %711 = vmatpush1.bf16.msra.mxu0 %v486_v39  ;;  %v944_v39 = vld [vmem:[%s3562_s2 + $0x98] sm:$0xff]  ;;  %1010 = vperm.xlu1 %2578, %v964_v34   ;;  %v951_v62 = vld [vmem:[%s3562_s2 + $0xd0] sm:$0xff]  ;;  %v468_v2 = vld [vmem:[%s2823_s27 + $0x1c0] sm:$0xff]  ;;  %v502_v4 = vpack.c.bf16 %v466_v55, %v464_v54 }
  0x2a   : > { %712 = vmatprep.subr.bf16.mxu0 %v489_v40  ;;  %v945_v40 = vld [vmem:[%s3562_s2 + $0xa0] sm:$0xff]  ;;  %v966_v46 = vpack.c.bf16 %v944_v39, %v943_v38  ;;  %1015 = vperm.xlu0 %2577, %v965_v37   ;;  %v952_v1 = vld [vmem:[%s3562_s2 + $0xd8] sm:$0xff]  ;;  %v470_v3 = vld [vmem:[%s2823_s27 + $0x1d0] sm:$0xff] }
  0x2b   : > { %v967_v49 = vpack.c.bf16 %v946_v41, %v945_v40  ;;  %v473_v5 = vld [vmem:[%s2823_s27 + $0x1e8] sm:$0xff]  ;;  %v970_v7 = vpack.c.bf16 %v952_v1, %v951_v62  ;;  %v955_v8 = vld [vmem:[%s3562_s2 + $0xf0] sm:$0xff]  ;;  %v956_v9 = vld [vmem:[%s3562_s2 + $0xf8] sm:$0xff]  ;;  %v504_v14 = vpack.c.bf16 %v470_v3, %v468_v2 }
  0x2c   : > { %v472_v12 = vld [vmem:[%s2823_s27 + $0x1e0] sm:$0xff]  ;;  %v474_v13 = vld [vmem:[%s2823_s27 + $0x1f0] sm:$0xff]  ;;  %v972_v16 = vpack.c.bf16 %v956_v9, %v955_v8  ;;  %v2018_v19 = vld [vmem:[%s3564_s4 + $0x8] sm:$0xff] }
  0x2d   : > { %713 = vmatpush1.bf16.msra.mxu0 %v488_v45  ;;  %v465_v45 = vld [vmem:[%s2823_s27 + $0x1a8] sm:$0xff]  ;;  %1020 = vperm.xlu1 %2578, %v966_v46   ;;  %v2017_v15 = vld [vmem:[%s3564_s4] sm:$0xff]  ;;  %v2019_v20 = vld [vmem:[%s3564_s4 + $0x10] sm:$0xff] }
  0x2e   : > { %714 = vmatprep.subr.bf16.mxu0 %v491_v48  ;;  %v501_v48 = vpack.c.bf16 %v463_v36, %v461_v33  ;;  %v503_v63 = vpack.c.bf16 %v467_v51, %v465_v45  ;;  %1025 = vperm.xlu0 %2577, %v967_v49   ;;  %v2579_v21 = vld [vmem:[%s3561_s1] ss:$8 sps:$4 sm:$0xff]   ;;  %v2020_v24 = vld [vmem:[%s3564_s4 + $0x18] sm:$0xff]  ;;  %v2023_v26 = vld [vmem:[%s3564_s4 + $0x30] sm:$0xff] }
  0x2f   : > { %v2021_v23 = vld [vmem:[%s3564_s4 + $0x20] sm:$0xff]  ;;  %v2022_v25 = vld [vmem:[%s3564_s4 + $0x28] sm:$0xff]  ;;  %v2584_v27 = vld [vmem:[%s3561_s1 + $0x10] ss:$8 sps:$4 sm:$0xff]  }
  0x30   : > { %v2585_v28 = vld [vmem:[%s3561_s1 + $0x24] ss:$8 sps:$4 sm:$0xff]   ;;  %v2024_v29 = vld [vmem:[%s3564_s4 + $0x38] sm:$0xff]  ;;  %v2027_v32 = vld [vmem:[%s3564_s4 + $0x50] sm:$0xff] }
  0x31   : > { %715 = vmatpush1.bf16.msra.mxu0 %v490_v57  ;;  %v469_v57 = vld [vmem:[%s2823_s27 + $0x1c8] sm:$0xff]  ;;  %1030 = vperm.xlu1 %2578, %v968_v59   ;;  %v2588_v34 = vld [vmem:[%s3561_s1 + $0x34] ss:$8 sps:$4 sm:$0xff]   ;;  %v2029_v36 = vld [vmem:[%s3564_s4 + $0x60] sm:$0xff] }
  0x32   : > { %716 = vmatprep.subr.bf16.mxu0 %v493_v61  ;;  %v954_v61 = vld [vmem:[%s3562_s2 + $0xe8] sm:$0xff]  ;;  %1035 = vperm.xlu0 %2577, %v969_v0   ;;  %v2031_v38 = vld [vmem:[%s3564_s4 + $0x70] sm:$0xff]  ;;  %v2032_v41 = vld [vmem:[%s3564_s4 + $0x78] sm:$0xff] }
  0x33   : > { %v971_v11 = vpack.c.bf16 %v954_v61, %v953_v60  ;;  %v2026_v31 = vld [vmem:[%s3564_s4 + $0x48] sm:$0xff]  ;;  %v2590_v39 = vld [vmem:[%s3561_s1 + $0x30] ss:$8 sps:$4 sm:$0xff]   ;;  %v2033_v42 = vld [vmem:[%s3564_s4 + $0x80] sm:$0xff] }
  0x34   : > { %v2587_v33 = vld [vmem:[%s3561_s1 + $0x20] ss:$8 sps:$4 sm:$0xff]   ;;  %v2591_v40 = vld [vmem:[%s3561_s1 + $0x44] ss:$8 sps:$4 sm:$0xff]   ;;  %v2035_v44 = vld [vmem:[%s3564_s4 + $0x90] sm:$0xff] }
  0x35   : > { %717 = vmatpush1.bf16.msra.mxu0 %v492_v6  ;;  %v475_v6 = vld [vmem:[%s2823_s27 + $0x1f8] sm:$0xff]  ;;  %1040 = vperm.xlu1 %2578, %v970_v7   ;;  %v2030_v37 = vld [vmem:[%s3564_s4 + $0x68] sm:$0xff]  ;;  %v2039_v50 = vld [vmem:[%s3564_s4 + $0xb0] sm:$0xff] }
  0x36   : > { %718 = vmatprep.subr.bf16.mxu0 %v495_v10  ;;  %v505_v10 = vpack.c.bf16 %v471_v58, %v469_v57  ;;  %v507_v17 = vpack.c.bf16 %v475_v6, %v473_v5  ;;  %1045 = vperm.xlu0 %2577, %v971_v11   ;;  %v2593_v45 = vld [vmem:[%s3561_s1 + $0x40] ss:$8 sps:$4 sm:$0xff]   ;;  %v2594_v46 = vld [vmem:[%s3561_s1 + $0x54] ss:$8 sps:$4 sm:$0xff]   ;;  %v2596_v51 = vld [vmem:[%s3561_s1 + $0x50] ss:$8 sps:$4 sm:$0xff]  }
  0x37   : > { %v2036_v47 = vld [vmem:[%s3564_s4 + $0x98] sm:$0xff]  ;;  %v2038_v49 = vld [vmem:[%s3564_s4 + $0xa8] sm:$0xff]  ;;  %v2041_v54 = vld [vmem:[%s3564_s4 + $0xc0] sm:$0xff] }
  0x38   : > { %v2597_v52 = vld [vmem:[%s3561_s1 + $0x64] ss:$8 sps:$4 sm:$0xff]   ;;  %v2040_v53 = vld [vmem:[%s3564_s4 + $0xb8] sm:$0xff]  ;;  %v2599_v57 = vld [vmem:[%s3561_s1 + $0x60] ss:$8 sps:$4 sm:$0xff]  }
  0x39   : > { %719 = vmatpush1.bf16.msra.mxu0 %v494_v18  ;;  %v506_v18 = vpack.c.bf16 %v474_v13, %v472_v12  ;;  %1050 = vperm.xlu1 %2578, %v972_v16   ;;  %v2042_v55 = vld [vmem:[%s3564_s4 + $0xc8] sm:$0xff]  ;;  %v2600_v58 = vld [vmem:[%s3561_s1 + $0x74] ss:$8 sps:$4 sm:$0xff]   ;;  %v2045_v60 = vld [vmem:[%s3564_s4 + $0xe0] sm:$0xff] }
  0x3a   : > { %720 = vmatprep.subr.bf16.mxu0 %v497_v22  ;;  %2051 = vperm.xlu0 %2577, %v2017_v15   ;;  %v2582_v22 = vld [vmem:[%s3561_s1 + $0x14] ss:$8 sps:$4 sm:$0xff]   ;;  %v2046_v61 = vld [vmem:[%s3564_s4 + $0xe8] sm:$0xff]  ;;  %v2614_v8 = vld [vmem:[%s3561_s1 + $0xb0] ss:$8 sps:$4 sm:$0xff]  }
  0x3b   : > { %v2044_v59 = vld [vmem:[%s3564_s4 + $0xd8] sm:$0xff]  ;;  %v2047_v62 = vld [vmem:[%s3564_s4 + $0xf0] sm:$0xff]  ;;  %v2603_v0 = vld [vmem:[%s3561_s1 + $0x84] ss:$8 sps:$4 sm:$0xff]  }
  0x3c   : > { %v2048_v1 = vld [vmem:[%s3564_s4 + $0xf8] sm:$0xff]  ;;  %v2605_v2 = vld [vmem:[%s3561_s1 + $0x80] ss:$8 sps:$4 sm:$0xff]   ;;  %v2609_v5 = vld [vmem:[%s3561_s1 + $0xa4] ss:$8 sps:$4 sm:$0xff]  }
  0x3d   : > { %721 = vmatpush1.bf16.msra.mxu0 %v496_v30  ;;  %2056 = vperm.xlu1 %2578, %v2018_v19   ;;  %v2025_v30 = vld [vmem:[%s3564_s4 + $0x40] sm:$0xff]  ;;  %v2606_v3 = vld [vmem:[%s3561_s1 + $0x94] ss:$8 sps:$4 sm:$0xff]   ;;  %v2620_v12 = vld [vmem:[%s3561_s1 + $0xd0] ss:$8 sps:$4 sm:$0xff]  }
  0x3e   : > { %722 = vmatprep.subr.bf16.mxu0 %v499_v35  ;;  %2061 = vperm.xlu0 %2577, %v2019_v20   ;;  %v2028_v35 = vld [vmem:[%s3564_s4 + $0x58] sm:$0xff]  ;;  %v2611_v6 = vld [vmem:[%s3561_s1 + $0xa0] ss:$8 sps:$4 sm:$0xff]   ;;  %v2615_v9 = vld [vmem:[%s3561_s1 + $0xc4] ss:$8 sps:$4 sm:$0xff]  }
  0x3f   : > { %v2612_v7 = vld [vmem:[%s3561_s1 + $0xb4] ss:$8 sps:$4 sm:$0xff]   ;;  %v2621_v13 = vld [vmem:[%s3561_s1 + $0xe4] ss:$8 sps:$4 sm:$0xff]   ;;  %v2626_v16 = vld [vmem:[%s3561_s1 + $0xf0] ss:$8 sps:$4 sm:$0xff]  }
  0x40   : > { %v2618_v11 = vld [vmem:[%s3561_s1 + $0xd4] ss:$8 sps:$4 sm:$0xff]  }
  0x41   : > { %723 = vmatpush1.bf16.msra.mxu0 %v498_v43  ;;  %2066 = vperm.xlu1 %2578, %v2020_v24   ;;  %v2034_v43 = vld [vmem:[%s3564_s4 + $0x88] sm:$0xff]  ;;  %v2624_v15 = vld [vmem:[%s3561_s1 + $0xf4] ss:$8 sps:$4 sm:$0xff]  }
  0x42   : > { %724 = vmatprep.subr.bf16.mxu0 %v501_v48  ;;  %2071 = vperm.xlu0 %2577, %v2021_v23   ;;  %v2037_v48 = vld [vmem:[%s3564_s4 + $0xa0] sm:$0xff] }
  0x45   : > { %725 = vmatpush1.bf16.msra.mxu0 %v500_v56  ;;  %2076 = vperm.xlu1 %2578, %v2022_v25   ;;  %v2043_v56 = vld [vmem:[%s3564_s4 + $0xd0] sm:$0xff] }
  0x46   : > { %726 = vmatprep.subr.bf16.mxu0 %v503_v63  ;;  %2081 = vperm.xlu0 %2577, %v2023_v26   ;;  %v2602_v63 = vld [vmem:[%s3561_s1 + $0x70] ss:$8 sps:$4 sm:$0xff]  }
  0x49   : > { %727 = vmatpush1.bf16.msra.mxu0 %v502_v4  ;;  %2086 = vperm.xlu1 %2578, %v2024_v29   ;;  %v2608_v4 = vld [vmem:[%s3561_s1 + $0x90] ss:$8 sps:$4 sm:$0xff]  }
  0x4a   : > { %728 = vmatprep.subr.bf16.mxu0 %v505_v10  ;;  %2091 = vperm.xlu0 %2577, %v2025_v30   ;;  %v2617_v10 = vld [vmem:[%s3561_s1 + $0xc0] ss:$8 sps:$4 sm:$0xff]  }
  0x4d   : > { %729 = vmatpush1.bf16.msra.mxu0 %v504_v14  ;;  %2096 = vperm.xlu1 %2578, %v2026_v31   ;;  %v2623_v14 = vld [vmem:[%s3561_s1 + $0xe0] ss:$8 sps:$4 sm:$0xff]  }
  0x4e   : > { %730 = vmatprep.subr.bf16.mxu0 %v507_v17  ;;  %2101 = vperm.xlu0 %2577, %v2027_v32  }
  0x51   : > { %731 = vmatpush1.bf16.msra.mxu0 %v506_v18  ;;  %2106 = vperm.xlu1 %2578, %v2028_v35  }
  0x52   : > { %2111 = vperm.xlu0 %2577, %v2029_v36  }
  0x54   : > { %733 = vmatmul.mubr.bf16.vlgmr.msra.gmra.mrb[0].mxu0 %v2579_v21 }
  0x55   : > { %742 = vmatprep.mubr.bf16.mxu0 %v2582_v22  ;;  %2116 = vperm.xlu1 %2578, %v2030_v37  }
  0x56   : > { %2121 = vperm.xlu0 %2577, %v2031_v38  }
  0x59   : > { %2126 = vperm.xlu1 %2578, %v2032_v41  }
  0x5a   : > { %2131 = vperm.xlu0 %2577, %v2033_v42  }
  0x5c   : > { %743 = vmatmul.mubr.bf16.gmra.mrb[4].mxu0 %v2584_v27 }
  0x5d   : > { %752 = vmatprep.mubr.bf16.mxu0 %v2585_v28  ;;  %2136 = vperm.xlu1 %2578, %v2034_v43  }
  0x5e   : > { %2141 = vperm.xlu0 %2577, %v2035_v44  }
  0x61   : > { %2146 = vperm.xlu1 %2578, %v2036_v47  }
  0x62   : > { %2151 = vperm.xlu0 %2577, %v2037_v48  }
  0x64   : > { %753 = vmatmul.mubr.bf16.gmra.mrb[8].mxu0 %v2587_v33 }
  0x65   : > { %762 = vmatprep.mubr.bf16.mxu0 %v2588_v34  ;;  %2156 = vperm.xlu1 %2578, %v2038_v49  }
  0x66   : > { %2161 = vperm.xlu0 %2577, %v2039_v50  }
  0x69   : > { %2166 = vperm.xlu1 %2578, %v2040_v53  }
  0x6a   : > { %2171 = vperm.xlu0 %2577, %v2041_v54  }
  0x6c   : > { %763 = vmatmul.mubr.bf16.gmra.mrb[12].mxu0 %v2590_v39 }
  0x6d   : > { %772 = vmatprep.mubr.bf16.mxu0 %v2591_v40  ;;  %2176 = vperm.xlu1 %2578, %v2042_v55  }
  0x6e   : > { %2181 = vperm.xlu0 %2577, %v2043_v56  }
  0x71   : > { %2186 = vperm.xlu1 %2578, %v2044_v59  }
  0x72   : > { %2191 = vperm.xlu0 %2577, %v2045_v60  }
  0x74   : > { %773 = vmatmul.mubr.bf16.gmra.mrb[16].mxu0 %v2593_v45 }
  0x75   : > { %782 = vmatprep.mubr.bf16.mxu0 %v2594_v46  ;;  %2196 = vperm.xlu1 %2578, %v2046_v61  }
  0x76   : > { %2201 = vperm.xlu0 %2577, %v2047_v62  }
  0x79   : > { %2206 = vperm.xlu1 %2578, %v2048_v1  }
  0x7c   : > { %783 = vmatmul.mubr.bf16.gmra.mrb[20].mxu0 %v2596_v51 }
  0x7d   : > { %792 = vmatprep.mubr.bf16.mxu0 %v2597_v52 }
  0x84   : > { %793 = vmatmul.mubr.bf16.gmra.mrb[24].mxu0 %v2599_v57 }
  0x85   : > { %802 = vmatprep.mubr.bf16.mxu0 %v2600_v58 }
  0x89   : > { %v976_v22 = vpop.permute.xlu0 %975 }
  0x8c   : > { %803 = vmatmul.mubr.bf16.gmra.mrb[28].mxu0 %v2602_v63 }
  0x8d   : > { %812 = vmatprep.mubr.bf16.mxu0 %v2603_v0  ;;  %v981_v36 = vpop.permute.xlu0 %980 }
  0x93   : > { %v986_v55 = vpop.permute.xlu1 %985 }
  0x94   : > { %813 = vmatmul.mubr.bf16.gmra.mrb[32].mxu0 %v2605_v2 }
  0x95   : > { %822 = vmatprep.mubr.bf16.mxu0 %v2606_v3 }
  0x9c   : > { %823 = vmatmul.mubr.bf16.gmra.mrb[36].mxu0 %v2608_v4 }
  0x9d   : > { %832 = vmatprep.mubr.bf16.mxu0 %v2609_v5 }
  0xa4   : > { %833 = vmatmul.mubr.bf16.gmra.mrb[40].mxu0 %v2611_v6 }
  0xa5   : > { %842 = vmatprep.mubr.bf16.mxu0 %v2612_v7 }
  0xac   : > { %843 = vmatmul.mubr.bf16.gmra.mrb[44].mxu0 %v2614_v8 }
  0xad   : > { %852 = vmatprep.mubr.bf16.mxu0 %v2615_v9 }
  0xb4   : > { %853 = vmatmul.mubr.bf16.gmra.mrb[48].mxu0 %v2617_v10 }
  0xb5   : > { %862 = vmatprep.mubr.bf16.mxu0 %v2618_v11  ;;  %v991_v11 = vpop.permute.xlu1 %990 }
  0xbc   : > { %863 = vmatmul.mubr.bf16.gmra.mrb[52].mxu0 %v2620_v12 }
  0xbd   : > { %872 = vmatprep.mubr.bf16.mxu0 %v2621_v13 }
  0xc4   : > { %873 = vmatmul.mubr.bf16.gmra.mrb[56].mxu0 %v2623_v14 }
  0xc5   : > { %882 = vmatprep.mubr.bf16.mxu0 %v2624_v15 }
  0xcc   : > { %883 = vmatmul.mubr.bf16.gmra.mrb[60].mxu0 %v2626_v16 }
 0x127   : > { %v734_v17 = vpop.f32.mrb[0].mxu0 }
 0x128   : > { %v736_v18 = vpop.f32.mrb[1].mxu0 }
 0x129   : > { %v738_v19 = vpop.f32.mrb[2].mxu0 }
 0x12a   : > { %v893_v20 = vpack.c.bf16 %v738_v19, %v734_v17  ;;  %v740_v21 = vpop.f32.mrb[3].mxu0 }
 0x12b   : > { %v894_v23 = vpack.c.bf16 %v740_v21, %v736_v18  ;;  %v2629_v18 = vld [vmem:[%s3563_s3 + $0x4] ss:$8 sps:$4 sm:$0xff]  }
 0x12c   : > { %v3174_v24 = vadd.bf16 %v976_v22, %v893_v20  ;;  %1661 = vmatprep.mubr.bf16.mxu1 %v2629_v18 }
 0x12d   : > { %v3176_v25 = vadd.bf16 %v976_v22, %v894_v23 }
 0x12e   : > { %v1085_v26 = vmul.bf16 %v3174_v24, %v3174_v24 }
 0x12f   : > { %v1086_v27 = vmul.bf16 %v3176_v25, %v3176_v25  ;;  %v744_v28 = vpop.f32.mrb[4].mxu0 }
 0x130   : > { %v746_v29 = vpop.f32.mrb[5].mxu0  ;;  %v1117_v30 = vmul.bf16 %v1085_v26, %v3174_v24 }
 0x131   : > { %v748_v31 = vpop.f32.mrb[6].mxu0  ;;  %v1118_v32 = vmul.bf16 %v1086_v27, %v3176_v25 }
 0x132   : > { %v895_v33 = vpack.c.bf16 %v748_v31, %v744_v28  ;;  %v750_v34 = vpop.f32.mrb[7].mxu0  ;;  %v1149_v35 = vmul.bf16 1027030327, %v1117_v30 }
 0x133   : > { %v896_v37 = vpack.c.bf16 %v750_v34, %v746_v29  ;;  %v1150_v38 = vmul.bf16 1027030327, %v1118_v32 }
 0x134   : > { %v3184_v39 = vadd.bf16 %v981_v36, %v895_v33  ;;  %v1181_v40 = vadd.bf16 %v1149_v35, %v3174_v24 }
 0x135   : > { %v3187_v41 = vadd.bf16 %v981_v36, %v896_v37  ;;  %v1182_v42 = vadd.bf16 %v1150_v38, %v3176_v25 }
 0x136   : > { %v1087_v43 = vmul.bf16 %v3184_v39, %v3184_v39  ;;  %v1213_v44 = vmul.bf16 1061961548, %v1181_v40 }
 0x137   : > { %v1088_v45 = vmul.bf16 %v3187_v41, %v3187_v41  ;;  %v754_v46 = vpop.f32.mrb[8].mxu0  ;;  %v1214_v47 = vmul.bf16 1061961548, %v1182_v42 }
 0x138   : > { %v1119_v48 = vmul.bf16 %v1087_v43, %v3184_v39  ;;  %v756_v49 = vpop.f32.mrb[9].mxu0  ;;  %2675 = vtanh.bf16 %v1213_v44  ;;  %v996_v43 = vpop.permute.xlu0 %995 }
 0x139   : > { %v1120_v50 = vmul.bf16 %v1088_v45, %v3187_v41  ;;  %v758_v51 = vpop.f32.mrb[10].mxu0  ;;  %2677 = vtanh.bf16 %v1214_v47 }
 0x13a   : > { %v1151_v52 = vmul.bf16 1027030327, %v1119_v48  ;;  %v897_v53 = vpack.c.bf16 %v758_v51, %v754_v46  ;;  %v760_v54 = vpop.f32.mrb[11].mxu0 }
 0x13b   : > { %v1152_v56 = vmul.bf16 1027030327, %v1120_v50  ;;  %v898_v57 = vpack.c.bf16 %v760_v54, %v756_v49 }
 0x13c   : > { %v3196_v58 = vadd.bf16 %v986_v55, %v897_v53  ;;  %v1183_v59 = vadd.bf16 %v1151_v52, %v3184_v39 }
 0x13d   : > { %v3199_v60 = vadd.bf16 %v986_v55, %v898_v57  ;;  %v1184_v61 = vadd.bf16 %v1152_v56, %v3187_v41 }
 0x13e   : > { %v1089_v62 = vmul.bf16 %v3196_v58, %v3196_v58  ;;  %v1215_v63 = vmul.bf16 1061961548, %v1183_v59 }
 0x13f   : > { %v1090_v0 = vmul.bf16 %v3199_v60, %v3199_v60  ;;  %v764_v1 = vpop.f32.mrb[12].mxu0  ;;  %v1216_v2 = vmul.bf16 1061961548, %v1184_v61 }
 0x140   : > { %v1121_v3 = vmul.bf16 %v1089_v62, %v3196_v58  ;;  %v766_v4 = vpop.f32.mrb[13].mxu0  ;;  %2679 = vtanh.bf16 %v1215_v63 }
 0x141   : > { %v1122_v5 = vmul.bf16 %v1090_v0, %v3199_v60  ;;  %v768_v6 = vpop.f32.mrb[14].mxu0  ;;  %2681 = vtanh.bf16 %v1216_v2 }
 0x142   : > { %v1153_v7 = vmul.bf16 1027030327, %v1121_v3  ;;  %v899_v8 = vpack.c.bf16 %v768_v6, %v764_v1  ;;  %v770_v9 = vpop.f32.mrb[15].mxu0  ;;  %v1001_v6 = vpop.permute.xlu1 %1000 }
 0x143   : > { %v2676_v10 = vpop.eup %2675  ;;  %v1154_v12 = vmul.bf16 1027030327, %v1122_v5  ;;  %v900_v13 = vpack.c.bf16 %v770_v9, %v766_v4 }
 0x144   : > { %v2678_v14 = vpop.eup %2677  ;;  %v3208_v15 = vadd.bf16 %v991_v11, %v899_v8  ;;  %v1277_v16 = vadd.bf16 1065369472, %v2676_v10  ;;  %v1185_v17 = vadd.bf16 %v1153_v7, %v3196_v58 }
 0x145   : > { %v3214_v19 = vadd.bf16 %v991_v11, %v900_v13  ;;  %v1278_v20 = vadd.bf16 1065369472, %v2678_v14  ;;  %v1186_v21 = vadd.bf16 %v1154_v12, %v3199_v60 }
 0x146   : > { %v1091_v22 = vmul.bf16 %v3208_v15, %v3208_v15  ;;  %v1309_v23 = vmul.bf16 1056980736, %v1277_v16  ;;  %v1217_v26 = vmul.bf16 1061961548, %v1185_v17 }
 0x147   : > { %v1092_v27 = vmul.bf16 %v3214_v19, %v3214_v19  ;;  %v774_v28 = vpop.f32.mrb[16].mxu0  ;;  %v1310_v29 = vmul.bf16 1056980736, %v1278_v20  ;;  %v1218_v30 = vmul.bf16 1061961548, %v1186_v21 }
 0x148   : > { %v1123_v31 = vmul.bf16 %v1091_v22, %v3208_v15  ;;  %v776_v32 = vpop.f32.mrb[17].mxu0  ;;  %2683 = vtanh.bf16 %v1217_v26  ;;  %v1341_v40 = vmul.bf16 %v1309_v23, %v3174_v24 }
 0x149   : > { %v1124_v33 = vmul.bf16 %v1092_v27, %v3214_v19  ;;  %v778_v34 = vpop.f32.mrb[18].mxu0  ;;  %v1342_v35 = vmul.bf16 %v1310_v29, %v3176_v25  ;;  %2685 = vtanh.bf16 %v1218_v30 }
 0x14a   : > { %v1155_v36 = vmul.bf16 1027030327, %v1123_v31  ;;  %v901_v37 = vpack.c.bf16 %v778_v34, %v774_v28  ;;  %v780_v38 = vpop.f32.mrb[19].mxu0 }
 0x14b   : > { %v2680_v42 = vpop.eup %2679  ;;  %v1156_v44 = vmul.bf16 1027030327, %v1124_v33  ;;  %v902_v45 = vpack.c.bf16 %v780_v38, %v776_v32  ;;  %1629 = vmatprep.subr.bf16.mxu1 %v1342_v35  ;;  %v1006_v35 = vpop.permute.xlu0 %1005 }
 0x14c   : > { %v2682_v46 = vpop.eup %2681  ;;  %v3225_v47 = vadd.bf16 %v996_v43, %v901_v37  ;;  %1630 = vmatpush1.bf16.msra.mxu1 %v1341_v40  ;;  %v1279_v48 = vadd.bf16 1065369472, %v2680_v42  ;;  %v1187_v49 = vadd.bf16 %v1155_v36, %v3208_v15 }
 0x14d   : > { %v3228_v50 = vadd.bf16 %v996_v43, %v902_v45  ;;  %v1280_v25 = vadd.bf16 1065369472, %v2682_v46  ;;  %v1188_v51 = vadd.bf16 %v1156_v44, %v3214_v19 }
 0x14e   : > { %v1093_v24 = vmul.bf16 %v3225_v47, %v3225_v47  ;;  %v1311_v52 = vmul.bf16 1056980736, %v1279_v48  ;;  %v1219_v53 = vmul.bf16 1061961548, %v1187_v49 }
 0x14f   : > { %v1094_v54 = vmul.bf16 %v3228_v50, %v3228_v50  ;;  %v784_v55 = vpop.f32.mrb[20].mxu0  ;;  %v1312_v56 = vmul.bf16 1056980736, %v1280_v25  ;;  %v1220_v57 = vmul.bf16 1061961548, %v1188_v51 }
 0x150   : > { %v1125_v59 = vmul.bf16 %v1093_v24, %v3225_v47  ;;  %v786_v61 = vpop.f32.mrb[21].mxu0  ;;  %2687 = vtanh.bf16 %v1219_v53  ;;  %v1343_v4 = vmul.bf16 %v1311_v52, %v3184_v39 }
 0x151   : > { %v1126_v62 = vmul.bf16 %v1094_v54, %v3228_v50  ;;  %v788_v63 = vpop.f32.mrb[22].mxu0  ;;  %v1344_v0 = vmul.bf16 %v1312_v56, %v3187_v41  ;;  %2689 = vtanh.bf16 %v1220_v57 }
 0x152   : > { %v1157_v1 = vmul.bf16 1027030327, %v1125_v59  ;;  %v903_v2 = vpack.c.bf16 %v788_v63, %v784_v55  ;;  %v790_v3 = vpop.f32.mrb[23].mxu0 }
 0x153   : > { %v2684_v5 = vpop.eup %2683  ;;  %v1158_v7 = vmul.bf16 1027030327, %v1126_v62  ;;  %v904_v8 = vpack.c.bf16 %v790_v3, %v786_v61  ;;  %1631 = vmatprep.subr.bf16.mxu1 %v1344_v0  ;;  %v1011_v0 = vpop.permute.xlu1 %1010 }
 0x154   : > { %v2686_v9 = vpop.eup %2685  ;;  %v3239_v10 = vadd.bf16 %v1001_v6, %v903_v2  ;;  %1632 = vmatpush1.bf16.msra.mxu1 %v1343_v4  ;;  %v1281_v11 = vadd.bf16 1065369472, %v2684_v5  ;;  %v1189_v12 = vadd.bf16 %v1157_v1, %v3225_v47 }
 0x155   : > { %v3242_v13 = vadd.bf16 %v1001_v6, %v904_v8  ;;  %v1282_v41 = vadd.bf16 1065369472, %v2686_v9  ;;  %v1190_v14 = vadd.bf16 %v1158_v7, %v3228_v50 }
 0x156   : > { %v1095_v39 = vmul.bf16 %v3239_v10, %v3239_v10  ;;  %v1313_v16 = vmul.bf16 1056980736, %v1281_v11  ;;  %v1221_v17 = vmul.bf16 1061961548, %v1189_v12 }
 0x157   : > { %v1096_v18 = vmul.bf16 %v3242_v13, %v3242_v13  ;;  %v794_v20 = vpop.f32.mrb[24].mxu0  ;;  %v1314_v21 = vmul.bf16 1056980736, %v1282_v41  ;;  %v1222_v22 = vmul.bf16 1061961548, %v1190_v14 }
 0x158   : > { %v1127_v23 = vmul.bf16 %v1095_v39, %v3239_v10  ;;  %v796_v26 = vpop.f32.mrb[25].mxu0  ;;  %2691 = vtanh.bf16 %v1221_v17  ;;  %v1345_v33 = vmul.bf16 %v1313_v16, %v3196_v58 }
 0x159   : > { %v1128_v27 = vmul.bf16 %v1096_v18, %v3242_v13  ;;  %v798_v28 = vpop.f32.mrb[26].mxu0  ;;  %v1346_v29 = vmul.bf16 %v1314_v21, %v3199_v60  ;;  %2693 = vtanh.bf16 %v1222_v22 }
 0x15a   : > { %v1159_v30 = vmul.bf16 1027030327, %v1127_v23  ;;  %v905_v31 = vpack.c.bf16 %v798_v28, %v794_v20  ;;  %v800_v32 = vpop.f32.mrb[27].mxu0 }
 0x15b   : > { %v2688_v34 = vpop.eup %2687  ;;  %v1160_v36 = vmul.bf16 1027030327, %v1128_v27  ;;  %v906_v37 = vpack.c.bf16 %v800_v32, %v796_v26  ;;  %1633 = vmatprep.subr.bf16.mxu1 %v1346_v29  ;;  %v1016_v29 = vpop.permute.xlu0 %1015 }
 0x15c   : > { %v2690_v38 = vpop.eup %2689  ;;  %v3253_v40 = vadd.bf16 %v1006_v35, %v905_v31  ;;  %1634 = vmatpush1.bf16.msra.mxu1 %v1345_v33  ;;  %v1283_v42 = vadd.bf16 1065369472, %v2688_v34  ;;  %v1191_v43 = vadd.bf16 %v1159_v30, %v3239_v10 }
 0x15d   : > { %v3256_v44 = vadd.bf16 %v1006_v35, %v906_v37  ;;  %v1284_v60 = vadd.bf16 1065369472, %v2690_v38  ;;  %v1192_v45 = vadd.bf16 %v1160_v36, %v3242_v13 }
 0x15e   : > { %v1097_v58 = vmul.bf16 %v3253_v40, %v3253_v40  ;;  %v1315_v46 = vmul.bf16 1056980736, %v1283_v42  ;;  %v1223_v48 = vmul.bf16 1061961548, %v1191_v43 }
 0x15f   : > { %v1098_v49 = vmul.bf16 %v3256_v44, %v3256_v44  ;;  %v804_v25 = vpop.f32.mrb[28].mxu0  ;;  %v1316_v51 = vmul.bf16 1056980736, %v1284_v60  ;;  %v1224_v24 = vmul.bf16 1061961548, %v1192_v45 }
 0x160   : > { %v1129_v52 = vmul.bf16 %v1097_v58, %v3253_v40  ;;  %v806_v53 = vpop.f32.mrb[29].mxu0  ;;  %2695 = vtanh.bf16 %v1223_v48  ;;  %v1347_v62 = vmul.bf16 %v1315_v46, %v3208_v15 }
 0x161   : > { %v1130_v54 = vmul.bf16 %v1098_v49, %v3256_v44  ;;  %v808_v55 = vpop.f32.mrb[30].mxu0  ;;  %v1348_v56 = vmul.bf16 %v1316_v51, %v3214_v19  ;;  %2697 = vtanh.bf16 %v1224_v24 }
 0x162   : > { %v1161_v57 = vmul.bf16 1027030327, %v1129_v52  ;;  %v907_v59 = vpack.c.bf16 %v808_v55, %v804_v25  ;;  %v810_v61 = vpop.f32.mrb[31].mxu0 }
 0x163   : > { %v2692_v63 = vpop.eup %2691  ;;  %v1162_v1 = vmul.bf16 1027030327, %v1130_v54  ;;  %v908_v2 = vpack.c.bf16 %v810_v61, %v806_v53  ;;  %1635 = vmatprep.subr.bf16.mxu1 %v1348_v56  ;;  %v1021_v56 = vpop.permute.xlu1 %1020 }
 0x164   : > { %v2694_v3 = vpop.eup %2693  ;;  %v3267_v4 = vadd.bf16 %v1011_v0, %v907_v59  ;;  %1636 = vmatpush1.bf16.msra.mxu1 %v1347_v62  ;;  %v1285_v5 = vadd.bf16 1065369472, %v2692_v63  ;;  %v1193_v6 = vadd.bf16 %v1161_v57, %v3253_v40 }
 0x165   : > { %v3270_v7 = vadd.bf16 %v1011_v0, %v908_v2  ;;  %v1286_v19 = vadd.bf16 1065369472, %v2694_v3  ;;  %v1194_v8 = vadd.bf16 %v1162_v1, %v3256_v44 }
 0x166   : > { %v1099_v15 = vmul.bf16 %v3267_v4, %v3267_v4  ;;  %v1317_v9 = vmul.bf16 1056980736, %v1285_v5  ;;  %v1225_v11 = vmul.bf16 1061961548, %v1193_v6 }
 0x167   : > { %v1100_v12 = vmul.bf16 %v3270_v7, %v3270_v7  ;;  %v814_v41 = vpop.f32.mrb[32].mxu0  ;;  %v1318_v14 = vmul.bf16 1056980736, %v1286_v19  ;;  %v1226_v39 = vmul.bf16 1061961548, %v1194_v8 }
 0x168   : > { %v1131_v16 = vmul.bf16 %v1099_v15, %v3267_v4  ;;  %v816_v17 = vpop.f32.mrb[33].mxu0  ;;  %2699 = vtanh.bf16 %v1225_v11  ;;  %v1349_v27 = vmul.bf16 %v1317_v9, %v3225_v47 }
 0x169   : > { %v1132_v18 = vmul.bf16 %v1100_v12, %v3270_v7  ;;  %v818_v20 = vpop.f32.mrb[34].mxu0  ;;  %v1350_v21 = vmul.bf16 %v1318_v14, %v3228_v50  ;;  %2701 = vtanh.bf16 %v1226_v39 }
 0x16a   : > { %v1163_v22 = vmul.bf16 1027030327, %v1131_v16  ;;  %v909_v23 = vpack.c.bf16 %v818_v20, %v814_v41  ;;  %v820_v26 = vpop.f32.mrb[35].mxu0 }
 0x16b   : > { %v2696_v28 = vpop.eup %2695  ;;  %v1164_v30 = vmul.bf16 1027030327, %v1132_v18  ;;  %v910_v31 = vpack.c.bf16 %v820_v26, %v816_v17  ;;  %1637 = vmatprep.subr.bf16.mxu1 %v1350_v21  ;;  %v1026_v21 = vpop.permute.xlu0 %1025 }
 0x16c   : > { %v2698_v32 = vpop.eup %2697  ;;  %v3281_v33 = vadd.bf16 %v1016_v29, %v909_v23  ;;  %1638 = vmatpush1.bf16.msra.mxu1 %v1349_v27  ;;  %v1287_v34 = vadd.bf16 1065369472, %v2696_v28  ;;  %v1195_v35 = vadd.bf16 %v1163_v22, %v3267_v4 }
 0x16d   : > { %v3284_v36 = vadd.bf16 %v1016_v29, %v910_v31  ;;  %v1288_v50 = vadd.bf16 1065369472, %v2698_v32  ;;  %v1196_v37 = vadd.bf16 %v1164_v30, %v3270_v7 }
 0x16e   : > { %v1101_v47 = vmul.bf16 %v3281_v33, %v3281_v33  ;;  %v1319_v38 = vmul.bf16 1056980736, %v1287_v34  ;;  %v1227_v42 = vmul.bf16 1061961548, %v1195_v35 }
 0x16f   : > { %v1102_v43 = vmul.bf16 %v3284_v36, %v3284_v36  ;;  %v824_v60 = vpop.f32.mrb[36].mxu0  ;;  %v1320_v45 = vmul.bf16 1056980736, %v1288_v50  ;;  %v1228_v58 = vmul.bf16 1061961548, %v1196_v37 }
 0x170   : > { %v1133_v46 = vmul.bf16 %v1101_v47, %v3281_v33  ;;  %v826_v48 = vpop.f32.mrb[37].mxu0  ;;  %2703 = vtanh.bf16 %v1227_v42  ;;  %v1351_v54 = vmul.bf16 %v1319_v38, %v3239_v10 }
 0x171   : > { %v1134_v49 = vmul.bf16 %v1102_v43, %v3284_v36  ;;  %v828_v25 = vpop.f32.mrb[38].mxu0  ;;  %v1352_v51 = vmul.bf16 %v1320_v45, %v3242_v13  ;;  %2705 = vtanh.bf16 %v1228_v58 }
 0x172   : > { %v1165_v24 = vmul.bf16 1027030327, %v1133_v46  ;;  %v911_v52 = vpack.c.bf16 %v828_v25, %v824_v60  ;;  %v830_v53 = vpop.f32.mrb[39].mxu0 }
 0x173   : > { %v2700_v55 = vpop.eup %2699  ;;  %v1166_v57 = vmul.bf16 1027030327, %v1134_v49  ;;  %v912_v59 = vpack.c.bf16 %v830_v53, %v826_v48  ;;  %1639 = vmatprep.subr.bf16.mxu1 %v1352_v51  ;;  %v1031_v51 = vpop.permute.xlu1 %1030 }
 0x174   : > { %v2702_v61 = vpop.eup %2701  ;;  %v3295_v62 = vadd.bf16 %v1021_v56, %v911_v52  ;;  %1640 = vmatpush1.bf16.msra.mxu1 %v1351_v54  ;;  %v1289_v63 = vadd.bf16 1065369472, %v2700_v55  ;;  %v1197_v0 = vadd.bf16 %v1165_v24, %v3281_v33 }
 0x175   : > { %v3298_v1 = vadd.bf16 %v1021_v56, %v912_v59  ;;  %v1290_v13 = vadd.bf16 1065369472, %v2702_v61  ;;  %v1198_v2 = vadd.bf16 %v1166_v57, %v3284_v36 }
 0x176   : > { %v1103_v10 = vmul.bf16 %v3295_v62, %v3295_v62  ;;  %v1321_v3 = vmul.bf16 1056980736, %v1289_v63  ;;  %v1229_v5 = vmul.bf16 1061961548, %v1197_v0 }
 0x177   : > { %v1104_v6 = vmul.bf16 %v3298_v1, %v3298_v1  ;;  %v834_v19 = vpop.f32.mrb[40].mxu0  ;;  %v1322_v8 = vmul.bf16 1056980736, %v1290_v13  ;;  %v1230_v15 = vmul.bf16 1061961548, %v1198_v2 }
 0x178   : > { %v1135_v9 = vmul.bf16 %v1103_v10, %v3295_v62  ;;  %v836_v11 = vpop.f32.mrb[41].mxu0  ;;  %2707 = vtanh.bf16 %v1229_v5  ;;  %v1353_v18 = vmul.bf16 %v1321_v3, %v3253_v40 }
 0x179   : > { %v1136_v12 = vmul.bf16 %v1104_v6, %v3298_v1  ;;  %v838_v41 = vpop.f32.mrb[42].mxu0  ;;  %v1354_v14 = vmul.bf16 %v1322_v8, %v3256_v44  ;;  %2709 = vtanh.bf16 %v1230_v15 }
 0x17a   : > { %v1167_v39 = vmul.bf16 1027030327, %v1135_v9  ;;  %v913_v16 = vpack.c.bf16 %v838_v41, %v834_v19  ;;  %v840_v17 = vpop.f32.mrb[43].mxu0 }
 0x17b   : > { %v2704_v20 = vpop.eup %2703  ;;  %v1168_v22 = vmul.bf16 1027030327, %v1136_v12  ;;  %v914_v23 = vpack.c.bf16 %v840_v17, %v836_v11  ;;  %1641 = vmatprep.subr.bf16.mxu1 %v1354_v14  ;;  %v1036_v14 = vpop.permute.xlu0 %1035 }
 0x17c   : > { %v2706_v26 = vpop.eup %2705  ;;  %v3309_v27 = vadd.bf16 %v1026_v21, %v913_v16  ;;  %1642 = vmatpush1.bf16.msra.mxu1 %v1353_v18  ;;  %v1291_v28 = vadd.bf16 1065369472, %v2704_v20  ;;  %v1199_v29 = vadd.bf16 %v1167_v39, %v3295_v62 }
 0x17d   : > { %v3312_v30 = vadd.bf16 %v1026_v21, %v914_v23  ;;  %v1292_v44 = vadd.bf16 1065369472, %v2706_v26  ;;  %v1200_v31 = vadd.bf16 %v1168_v22, %v3298_v1 }
 0x17e   : > { %v1105_v40 = vmul.bf16 %v3309_v27, %v3309_v27  ;;  %v1323_v32 = vmul.bf16 1056980736, %v1291_v28  ;;  %v1231_v34 = vmul.bf16 1061961548, %v1199_v29 }
 0x17f   : > { %v1106_v35 = vmul.bf16 %v3312_v30, %v3312_v30  ;;  %v844_v50 = vpop.f32.mrb[44].mxu0  ;;  %v1324_v37 = vmul.bf16 1056980736, %v1292_v44  ;;  %v1232_v47 = vmul.bf16 1061961548, %v1200_v31 }
 0x180   : > { %v1137_v38 = vmul.bf16 %v1105_v40, %v3309_v27  ;;  %v846_v42 = vpop.f32.mrb[45].mxu0  ;;  %2711 = vtanh.bf16 %v1231_v34  ;;  %v1355_v49 = vmul.bf16 %v1323_v32, %v3267_v4 }
 0x181   : > { %v1138_v43 = vmul.bf16 %v1106_v35, %v3312_v30  ;;  %v848_v60 = vpop.f32.mrb[46].mxu0  ;;  %v1356_v45 = vmul.bf16 %v1324_v37, %v3270_v7  ;;  %2713 = vtanh.bf16 %v1232_v47 }
 0x182   : > { %v1169_v58 = vmul.bf16 1027030327, %v1137_v38  ;;  %v915_v46 = vpack.c.bf16 %v848_v60, %v844_v50  ;;  %v850_v48 = vpop.f32.mrb[47].mxu0 }
 0x183   : > { %v2708_v25 = vpop.eup %2707  ;;  %v1170_v24 = vmul.bf16 1027030327, %v1138_v43  ;;  %v916_v52 = vpack.c.bf16 %v850_v48, %v846_v42  ;;  %1643 = vmatprep.subr.bf16.mxu1 %v1356_v45  ;;  %v1041_v45 = vpop.permute.xlu1 %1040 }
 0x184   : > { %v2710_v53 = vpop.eup %2709  ;;  %v3323_v54 = vadd.bf16 %v1031_v51, %v915_v46  ;;  %1644 = vmatpush1.bf16.msra.mxu1 %v1355_v49  ;;  %v1293_v55 = vadd.bf16 1065369472, %v2708_v25  ;;  %v1201_v56 = vadd.bf16 %v1169_v58, %v3309_v27 }
 0x185   : > { %v3326_v57 = vadd.bf16 %v1031_v51, %v916_v52  ;;  %v1294_v7 = vadd.bf16 1065369472, %v2710_v53  ;;  %v1202_v59 = vadd.bf16 %v1170_v24, %v3312_v30 }
 0x186   : > { %v1107_v4 = vmul.bf16 %v3323_v54, %v3323_v54  ;;  %v1325_v61 = vmul.bf16 1056980736, %v1293_v55  ;;  %v1233_v63 = vmul.bf16 1061961548, %v1201_v56 }
 0x187   : > { %v1108_v0 = vmul.bf16 %v3326_v57, %v3326_v57  ;;  %v854_v13 = vpop.f32.mrb[48].mxu0  ;;  %v1326_v2 = vmul.bf16 1056980736, %v1294_v7  ;;  %v1234_v10 = vmul.bf16 1061961548, %v1202_v59 }
 0x188   : > { %v1139_v3 = vmul.bf16 %v1107_v4, %v3323_v54  ;;  %v856_v5 = vpop.f32.mrb[49].mxu0  ;;  %2715 = vtanh.bf16 %v1233_v63  ;;  %v1357_v12 = vmul.bf16 %v1325_v61, %v3281_v33 }
 0x189   : > { %v1140_v6 = vmul.bf16 %v1108_v0, %v3326_v57  ;;  %v858_v19 = vpop.f32.mrb[50].mxu0  ;;  %v1358_v8 = vmul.bf16 %v1326_v2, %v3284_v36  ;;  %2717 = vtanh.bf16 %v1234_v10 }
 0x18a   : > { %v1171_v15 = vmul.bf16 1027030327, %v1139_v3  ;;  %v917_v9 = vpack.c.bf16 %v858_v19, %v854_v13  ;;  %v860_v11 = vpop.f32.mrb[51].mxu0 }
 0x18b   : > { %v2712_v41 = vpop.eup %2711  ;;  %v1172_v39 = vmul.bf16 1027030327, %v1140_v6  ;;  %v918_v16 = vpack.c.bf16 %v860_v11, %v856_v5  ;;  %1645 = vmatprep.subr.bf16.mxu1 %v1358_v8  ;;  %v1046_v8 = vpop.permute.xlu0 %1045 }
 0x18c   : > { %v2714_v17 = vpop.eup %2713  ;;  %v3337_v18 = vadd.bf16 %v1036_v14, %v917_v9  ;;  %1646 = vmatpush1.bf16.msra.mxu1 %v1357_v12  ;;  %v1295_v20 = vadd.bf16 1065369472, %v2712_v41  ;;  %v1203_v21 = vadd.bf16 %v1171_v15, %v3323_v54 }
 0x18d   : > { %v3340_v22 = vadd.bf16 %v1036_v14, %v918_v16  ;;  %v1296_v36 = vadd.bf16 1065369472, %v2714_v17  ;;  %v1204_v23 = vadd.bf16 %v1172_v39, %v3326_v57 }
 0x18e   : > { %v1109_v33 = vmul.bf16 %v3337_v18, %v3337_v18  ;;  %v1327_v26 = vmul.bf16 1056980736, %v1295_v20  ;;  %v1235_v28 = vmul.bf16 1061961548, %v1203_v21 }
 0x18f   : > { %v1110_v29 = vmul.bf16 %v3340_v22, %v3340_v22  ;;  %v864_v44 = vpop.f32.mrb[52].mxu0  ;;  %v1328_v31 = vmul.bf16 1056980736, %v1296_v36  ;;  %v1236_v40 = vmul.bf16 1061961548, %v1204_v23 }
 0x190   : > { %v1141_v32 = vmul.bf16 %v1109_v33, %v3337_v18  ;;  %v866_v34 = vpop.f32.mrb[53].mxu0  ;;  %2719 = vtanh.bf16 %v1235_v28  ;;  %v1359_v43 = vmul.bf16 %v1327_v26, %v3295_v62 }
 0x191   : > { %v1142_v35 = vmul.bf16 %v1110_v29, %v3340_v22  ;;  %v868_v50 = vpop.f32.mrb[54].mxu0  ;;  %v1360_v37 = vmul.bf16 %v1328_v31, %v3298_v1  ;;  %2721 = vtanh.bf16 %v1236_v40 }
 0x192   : > { %v1173_v47 = vmul.bf16 1027030327, %v1141_v32  ;;  %v919_v38 = vpack.c.bf16 %v868_v50, %v864_v44  ;;  %v870_v42 = vpop.f32.mrb[55].mxu0 }
 0x193   : > { %v2716_v60 = vpop.eup %2715  ;;  %v1174_v58 = vmul.bf16 1027030327, %v1142_v35  ;;  %v920_v46 = vpack.c.bf16 %v870_v42, %v866_v34  ;;  %1647 = vmatprep.subr.bf16.mxu1 %v1360_v37  ;;  %v1051_v37 = vpop.permute.xlu1 %1050 }
 0x194   : > { %v2718_v48 = vpop.eup %2717  ;;  %v3351_v49 = vadd.bf16 %v1041_v45, %v919_v38  ;;  %1648 = vmatpush1.bf16.msra.mxu1 %v1359_v43  ;;  %v1297_v25 = vadd.bf16 1065369472, %v2716_v60  ;;  %v1205_v51 = vadd.bf16 %v1173_v47, %v3337_v18 }
 0x195   : > { %v3354_v24 = vadd.bf16 %v1041_v45, %v920_v46  ;;  %v1298_v1 = vadd.bf16 1065369472, %v2718_v48  ;;  %v1206_v52 = vadd.bf16 %v1174_v58, %v3340_v22 }
 0x196   : > { %v1111_v62 = vmul.bf16 %v3351_v49, %v3351_v49  ;;  %v1329_v53 = vmul.bf16 1056980736, %v1297_v25  ;;  %v1237_v55 = vmul.bf16 1061961548, %v1205_v51 }
 0x197   : > { %v1112_v56 = vmul.bf16 %v3354_v24, %v3354_v24  ;;  %v874_v7 = vpop.f32.mrb[56].mxu0  ;;  %v1330_v59 = vmul.bf16 1056980736, %v1298_v1  ;;  %v1238_v4 = vmul.bf16 1061961548, %v1206_v52 }
 0x198   : > { %v1143_v61 = vmul.bf16 %v1111_v62, %v3351_v49  ;;  %v876_v63 = vpop.f32.mrb[57].mxu0  ;;  %2723 = vtanh.bf16 %v1237_v55  ;;  %v1361_v6 = vmul.bf16 %v1329_v53, %v3309_v27 }
 0x199   : > { %v1144_v0 = vmul.bf16 %v1112_v56, %v3354_v24  ;;  %v878_v13 = vpop.f32.mrb[58].mxu0  ;;  %v1362_v2 = vmul.bf16 %v1330_v59, %v3312_v30  ;;  %2725 = vtanh.bf16 %v1238_v4 }
 0x19a   : > { %v1175_v10 = vmul.bf16 1027030327, %v1143_v61  ;;  %v921_v3 = vpack.c.bf16 %v878_v13, %v874_v7  ;;  %v880_v5 = vpop.f32.mrb[59].mxu0 }
 0x19b   : > { %v2720_v19 = vpop.eup %2719  ;;  %v1176_v15 = vmul.bf16 1027030327, %v1144_v0  ;;  %v922_v9 = vpack.c.bf16 %v880_v5, %v876_v63  ;;  %1649 = vmatprep.subr.bf16.mxu1 %v1362_v2 }
 0x19c   : > { %v2722_v11 = vpop.eup %2721  ;;  %v3365_v12 = vadd.bf16 %v1046_v8, %v921_v3  ;;  %1650 = vmatpush1.bf16.msra.mxu1 %v1361_v6  ;;  %v1299_v41 = vadd.bf16 1065369472, %v2720_v19  ;;  %v1207_v14 = vadd.bf16 %v1175_v10, %v3351_v49 }
 0x19d   : > { %v3368_v39 = vadd.bf16 %v1046_v8, %v922_v9  ;;  %v1300_v30 = vadd.bf16 1065369472, %v2722_v11  ;;  %v1208_v16 = vadd.bf16 %v1176_v15, %v3354_v24 }
 0x19e   : > { %v1113_v27 = vmul.bf16 %v3365_v12, %v3365_v12  ;;  %v1331_v17 = vmul.bf16 1056980736, %v1299_v41  ;;  %v1239_v20 = vmul.bf16 1061961548, %v1207_v14 }
 0x19f   : > { %v1114_v21 = vmul.bf16 %v3368_v39, %v3368_v39  ;;  %v884_v36 = vpop.f32.mrb[60].mxu0  ;;  %v1332_v23 = vmul.bf16 1056980736, %v1300_v30  ;;  %v1240_v33 = vmul.bf16 1061961548, %v1208_v16 }
 0x1a0   : > { %v1145_v26 = vmul.bf16 %v1113_v27, %v3365_v12  ;;  %v886_v28 = vpop.f32.mrb[61].mxu0  ;;  %2727 = vtanh.bf16 %v1239_v20  ;;  %v1363_v35 = vmul.bf16 %v1331_v17, %v3323_v54 }
 0x1a1   : > { %v1146_v29 = vmul.bf16 %v1114_v21, %v3368_v39  ;;  %v888_v44 = vpop.f32.mrb[62].mxu0  ;;  %v1364_v31 = vmul.bf16 %v1332_v23, %v3326_v57  ;;  %2729 = vtanh.bf16 %v1240_v33  ;;  %v2627_v23 = vld [vmem:[%s3563_s3] ss:$8 sps:$4 sm:$0xff]   ;;  %v2633_v33 = vld [vmem:[%s3563_s3 + $0x24] ss:$8 sps:$4 sm:$0xff]  }
 0x1a2   : > { %v1177_v40 = vmul.bf16 1027030327, %v1145_v26  ;;  %v923_v32 = vpack.c.bf16 %v888_v44, %v884_v36  ;;  %v890_v34 = vpop.f32.mrb[63].mxu0  ;;  %v2635_v26 = vld [vmem:[%s3563_s3 + $0x20] ss:$8 sps:$4 sm:$0xff]  }
 0x1a3   : > { %v2724_v50 = vpop.eup %2723  ;;  %v1178_v47 = vmul.bf16 1027030327, %v1146_v29  ;;  %v924_v38 = vpack.c.bf16 %v890_v34, %v886_v28  ;;  %1651 = vmatprep.subr.bf16.mxu1 %v1364_v31  ;;  %v2636_v28 = vld [vmem:[%s3563_s3 + $0x34] ss:$8 sps:$4 sm:$0xff]   ;;  %v2638_v29 = vld [vmem:[%s3563_s3 + $0x30] ss:$8 sps:$4 sm:$0xff]  }
 0x1a4   : > { %v2726_v42 = vpop.eup %2725  ;;  %v1083_v43 = vadd.bf16 %v1051_v37, %v923_v32  ;;  %1652 = vmatpush1.bf16.msra.mxu1 %v1363_v35  ;;  %v1301_v60 = vadd.bf16 1065369472, %v2724_v50  ;;  %v1209_v45 = vadd.bf16 %v1177_v40, %v3365_v12  ;;  %v2639_v44 = vld [vmem:[%s3563_s3 + $0x44] ss:$8 sps:$4 sm:$0xff]   ;;  %v2641_v31 = vld [vmem:[%s3563_s3 + $0x40] ss:$8 sps:$4 sm:$0xff]  }
 0x1a5   : > { %v1084_v58 = vadd.bf16 %v1051_v37, %v924_v38  ;;  %v1302_v46 = vadd.bf16 1065369472, %v2726_v42  ;;  %v1210_v57 = vadd.bf16 %v1178_v47, %v3368_v39  ;;  %v2642_v40 = vld [vmem:[%s3563_s3 + $0x54] ss:$8 sps:$4 sm:$0xff]   ;;  %v2644_v32 = vld [vmem:[%s3563_s3 + $0x50] ss:$8 sps:$4 sm:$0xff]  }
 0x1a6   : > { %v1115_v48 = vmul.bf16 %v1083_v43, %v1083_v43  ;;  %v1333_v25 = vmul.bf16 1056980736, %v1301_v60  ;;  %v1241_v51 = vmul.bf16 1061961548, %v1209_v45  ;;  %v2645_v34 = vld [vmem:[%s3563_s3 + $0x64] ss:$8 sps:$4 sm:$0xff]  }
 0x1a7   : > { %v1116_v1 = vmul.bf16 %v1084_v58, %v1084_v58  ;;  %v1334_v54 = vmul.bf16 1056980736, %v1302_v46  ;;  %v1242_v52 = vmul.bf16 1061961548, %v1210_v57  ;;  %v2647_v35 = vld [vmem:[%s3563_s3 + $0x60] ss:$8 sps:$4 sm:$0xff]  }
 0x1a8   : > { %v1147_v62 = vmul.bf16 %v1115_v48, %v1083_v43  ;;  %2731 = vtanh.bf16 %v1241_v51  ;;  %v1365_v7 = vmul.bf16 %v1333_v25, %v3337_v18  ;;  %v2648_v50 = vld [vmem:[%s3563_s3 + $0x74] ss:$8 sps:$4 sm:$0xff]   ;;  %v2650_v37 = vld [vmem:[%s3563_s3 + $0x70] ss:$8 sps:$4 sm:$0xff]   ;;  %v2651_v47 = vld [vmem:[%s3563_s3 + $0x84] ss:$8 sps:$4 sm:$0xff]  }
 0x1a9   : > { %v1148_v53 = vmul.bf16 %v1116_v1, %v1084_v58  ;;  %v1366_v55 = vmul.bf16 %v1334_v54, %v3340_v22  ;;  %2733 = vtanh.bf16 %v1242_v52  ;;  %v2653_v38 = vld [vmem:[%s3563_s3 + $0x80] ss:$8 sps:$4 sm:$0xff]   ;;  %v2654_v42 = vld [vmem:[%s3563_s3 + $0x94] ss:$8 sps:$4 sm:$0xff]   ;;  %v2657_v60 = vld [vmem:[%s3563_s3 + $0xa4] ss:$8 sps:$4 sm:$0xff]  }
 0x1aa   : > { %v1179_v56 = vmul.bf16 1027030327, %v1147_v62  ;;  %v2659_v45 = vld [vmem:[%s3563_s3 + $0xa0] ss:$8 sps:$4 sm:$0xff]   ;;  %v2662_v46 = vld [vmem:[%s3563_s3 + $0xb0] ss:$8 sps:$4 sm:$0xff]  }
 0x1ab   : > { %v2728_v59 = vpop.eup %2727  ;;  %v1180_v4 = vmul.bf16 1027030327, %v1148_v53  ;;  %1653 = vmatprep.subr.bf16.mxu1 %v1366_v55  ;;  %v2663_v57 = vld [vmem:[%s3563_s3 + $0xc4] ss:$8 sps:$4 sm:$0xff]   ;;  %v2665_v48 = vld [vmem:[%s3563_s3 + $0xc0] ss:$8 sps:$4 sm:$0xff]   ;;  %v2052_v53 = vpop.permute.xlu0 %2051 }
 0x1ac   : > { %v2730_v61 = vpop.eup %2729  ;;  %1654 = vmatpush1.bf16.msra.mxu1 %v1365_v7  ;;  %v1303_v63 = vadd.bf16 1065369472, %v2728_v59  ;;  %v1211_v0 = vadd.bf16 %v1179_v56, %v1083_v43  ;;  %v2666_v25 = vld [vmem:[%s3563_s3 + $0xd4] ss:$8 sps:$4 sm:$0xff]   ;;  %v2668_v51 = vld [vmem:[%s3563_s3 + $0xd0] ss:$8 sps:$4 sm:$0xff]   ;;  %v2057_v59 = vpop.permute.xlu1 %2056 }
 0x1ad   : > { %v1304_v13 = vadd.bf16 1065369472, %v2730_v61  ;;  %v1212_v2 = vadd.bf16 %v1180_v4, %v1084_v58  ;;  %v2669_v1 = vld [vmem:[%s3563_s3 + $0xe4] ss:$8 sps:$4 sm:$0xff]   ;;  %v2671_v54 = vld [vmem:[%s3563_s3 + $0xe0] ss:$8 sps:$4 sm:$0xff]  }
 0x1ae   : > { %v1335_v10 = vmul.bf16 1056980736, %v1303_v63  ;;  %v1243_v3 = vmul.bf16 1061961548, %v1211_v0  ;;  %v2672_v52 = vld [vmem:[%s3563_s3 + $0xf4] ss:$8 sps:$4 sm:$0xff]  }
 0x1af   : > { %v1336_v5 = vmul.bf16 1056980736, %v1304_v13  ;;  %v1244_v6 = vmul.bf16 1061961548, %v1212_v2  ;;  %v2674_v62 = vld [vmem:[%s3563_s3 + $0xf0] ss:$8 sps:$4 sm:$0xff]   ;;  %v2062_v2 = vpop.permute.xlu0 %2061 }
 0x1b0   : > { %2735 = vtanh.bf16 %v1243_v3  ;;  %v1367_v19 = vmul.bf16 %v1335_v10, %v3351_v49 }
 0x1b1   : > { %v1368_v22 = vmul.bf16 %v1336_v5, %v3354_v24  ;;  %2737 = vtanh.bf16 %v1244_v6  ;;  %v2067_v6 = vpop.permute.xlu1 %2066 }
 0x1b3   : > { %v2732_v18 = vpop.eup %2731  ;;  %1655 = vmatprep.subr.bf16.mxu1 %v1368_v22 }
 0x1b4   : > { %v2734_v8 = vpop.eup %2733  ;;  %1656 = vmatpush1.bf16.msra.mxu1 %v1367_v19  ;;  %v1305_v15 = vadd.bf16 1065369472, %v2732_v18 }
 0x1b5   : > { %v1306_v9 = vadd.bf16 1065369472, %v2734_v8 }
 0x1b6   : > { %v1337_v11 = vmul.bf16 1056980736, %v1305_v15 }
 0x1b7   : > { %v1338_v41 = vmul.bf16 1056980736, %v1306_v9  ;;  %v2072_v9 = vpop.permute.xlu0 %2071 }
 0x1b8   : > { %v1369_v30 = vmul.bf16 %v1337_v11, %v3365_v12  ;;  %v2630_v12 = vld [vmem:[%s3563_s3 + $0x14] ss:$8 sps:$4 sm:$0xff]  }
 0x1b9   : > { %v1370_v14 = vmul.bf16 %v1338_v41, %v3368_v39  ;;  %v2632_v39 = vld [vmem:[%s3563_s3 + $0x10] ss:$8 sps:$4 sm:$0xff]  }
 0x1bb   : > { %v2736_v16 = vpop.eup %2735  ;;  %1657 = vmatprep.subr.bf16.mxu1 %v1370_v14 }
 0x1bc   : > { %v2738_v27 = vpop.eup %2737  ;;  %1658 = vmatpush1.bf16.msra.mxu1 %v1369_v30  ;;  %v1307_v24 = vadd.bf16 1065369472, %v2736_v16  ;;  %v2077_v30 = vpop.permute.xlu1 %2076 }
 0x1bd   : > { %v1308_v17 = vadd.bf16 1065369472, %v2738_v27 }
 0x1be   : > { %v1339_v20 = vmul.bf16 1056980736, %v1307_v24 }
 0x1bf   : > { %v1340_v49 = vmul.bf16 1056980736, %v1308_v17 }
 0x1c0   : > { %v1371_v36 = vmul.bf16 %v1339_v20, %v1083_v43  ;;  %v2656_v43 = vld [vmem:[%s3563_s3 + $0x90] ss:$8 sps:$4 sm:$0xff]  }
 0x1c1   : > { %v1372_v21 = vmul.bf16 %v1340_v49, %v1084_v58  ;;  %v2660_v58 = vld [vmem:[%s3563_s3 + $0xb4] ss:$8 sps:$4 sm:$0xff]   ;;  %v2082_v49 = vpop.permute.xlu0 %2081 }
 0x1c3   : > { %1659 = vmatprep.subr.bf16.mxu1 %v1372_v21 }
 0x1c4   : > { %1660 = vmatpush1.bf16.msra.mxu1 %v1371_v36 }
 0x1c7   : > { %1662 = vmatmul.mubr.bf16.vlgmr.msra.gmra.mrb[0].mxu1 %v2627_v23 }
 0x1c8   : > { %1671 = vmatprep.mubr.bf16.mxu1 %v2630_v12  ;;  %v2087_v12 = vpop.permute.xlu1 %2086 }
 0x1cf   : > { %1672 = vmatmul.mubr.bf16.gmra.mrb[4].mxu1 %v2632_v39 }
 0x1d0   : > { %1681 = vmatprep.mubr.bf16.mxu1 %v2633_v33 }
 0x1d7   : > { %1682 = vmatmul.mubr.bf16.gmra.mrb[8].mxu1 %v2635_v26 }
 0x1d8   : > { %1691 = vmatprep.mubr.bf16.mxu1 %v2636_v28 }
 0x1df   : > { %1692 = vmatmul.mubr.bf16.gmra.mrb[12].mxu1 %v2638_v29 }
 0x1e0   : > { %1701 = vmatprep.mubr.bf16.mxu1 %v2639_v44  ;;  %v2092_v44 = vpop.permute.xlu0 %2091 }
 0x1e7   : > { %1702 = vmatmul.mubr.bf16.gmra.mrb[16].mxu1 %v2641_v31 }
 0x1e8   : > { %1711 = vmatprep.mubr.bf16.mxu1 %v2642_v40 }
 0x1ef   : > { %1712 = vmatmul.mubr.bf16.gmra.mrb[20].mxu1 %v2644_v32 }
 0x1f0   : > { %1721 = vmatprep.mubr.bf16.mxu1 %v2645_v34  ;;  %v2097_v34 = vpop.permute.xlu1 %2096 }
 0x1f7   : > { %1722 = vmatmul.mubr.bf16.gmra.mrb[24].mxu1 %v2647_v35 }
 0x1f8   : > { %1731 = vmatprep.mubr.bf16.mxu1 %v2648_v50 }
 0x1ff   : > { %1732 = vmatmul.mubr.bf16.gmra.mrb[28].mxu1 %v2650_v37 }
 0x200   : > { %1741 = vmatprep.mubr.bf16.mxu1 %v2651_v47 }
 0x207   : > { %1742 = vmatmul.mubr.bf16.gmra.mrb[32].mxu1 %v2653_v38 }
 0x208   : > { %1751 = vmatprep.mubr.bf16.mxu1 %v2654_v42  ;;  %v2102_v42 = vpop.permute.xlu0 %2101 }
 0x20f   : > { %1752 = vmatmul.mubr.bf16.gmra.mrb[36].mxu1 %v2656_v43 }
 0x210   : > { %1761 = vmatprep.mubr.bf16.mxu1 %v2657_v60 }
 0x217   : > { %1762 = vmatmul.mubr.bf16.gmra.mrb[40].mxu1 %v2659_v45 }
 0x218   : > { %1771 = vmatprep.mubr.bf16.mxu1 %v2660_v58  ;;  %v2107_v58 = vpop.permute.xlu1 %2106 }
 0x21f   : > { %1772 = vmatmul.mubr.bf16.gmra.mrb[44].mxu1 %v2662_v46 }
 0x220   : > { %1781 = vmatprep.mubr.bf16.mxu1 %v2663_v57 }
 0x227   : > { %1782 = vmatmul.mubr.bf16.gmra.mrb[48].mxu1 %v2665_v48 }
 0x228   : > { %1791 = vmatprep.mubr.bf16.mxu1 %v2666_v25 }
 0x22f   : > { %1792 = vmatmul.mubr.bf16.gmra.mrb[52].mxu1 %v2668_v51 }
 0x230   : > { %1801 = vmatprep.mubr.bf16.mxu1 %v2669_v1  ;;  %v2112_v1 = vpop.permute.xlu0 %2111 }
 0x237   : > { %1802 = vmatmul.mubr.bf16.gmra.mrb[56].mxu1 %v2671_v54 }
 0x238   : > { %1811 = vmatprep.mubr.bf16.mxu1 %v2672_v52 }
 0x23f   : > { %1812 = vmatmul.mubr.bf16.gmra.mrb[60].mxu1 %v2674_v62 }
 0x29a   : > { %v1663_v55 = vpop.f32.mrb[0].mxu1 }
 0x29b   : > { %v2209_v56 = vadd.f32 %v2052_v53, %v1663_v55  ;;  %v1665_v7 = vpop.f32.mrb[1].mxu1 }
 0x29c   : > { %v2210_v4 = vadd.f32 %v2052_v53, %v1665_v7  ;;  %v1667_v61 = vpop.f32.mrb[2].mxu1  ;;  %v2117_v53 = vpop.permute.xlu1 %2116 }
 0x29d   : > { %2273 = vst [vmem:[%s3485_s26] sm:$0xff] %v2209_v56  ;;  %v2211_v63 = vadd.f32 %v2057_v59, %v1667_v61  ;;  %v1669_v0 = vpop.f32.mrb[3].mxu1  ;;  %v2122_v61 = vpop.permute.xlu0 %2121 }
 0x29e   : > { %2274 = vst [vmem:[%s3485_s26 + $0x8] sm:$0xff] %v2210_v4  ;;  %v2212_v13 = vadd.f32 %v2057_v59, %v1669_v0 }
 0x29f   : > { %2275 = vst [vmem:[%s3485_s26 + $0x10] sm:$0xff] %v2211_v63 }
 0x2a0   : > { %2276 = vst [vmem:[%s3485_s26 + $0x18] sm:$0xff] %v2212_v13 }
 0x2a2   : > { %v1673_v10 = vpop.f32.mrb[4].mxu1 }
 0x2a3   : > { %v2213_v3 = vadd.f32 %v2062_v2, %v1673_v10  ;;  %v1675_v5 = vpop.f32.mrb[5].mxu1 }
 0x2a4   : > { %v2214_v22 = vadd.f32 %v2062_v2, %v1675_v5  ;;  %v1677_v19 = vpop.f32.mrb[6].mxu1  ;;  %v2127_v2 = vpop.permute.xlu1 %2126 }
 0x2a5   : > { %2277 = vst [vmem:[%s3485_s26 + $0x20] sm:$0xff] %v2213_v3  ;;  %v2215_v18 = vadd.f32 %v2067_v6, %v1677_v19  ;;  %v1679_v8 = vpop.f32.mrb[7].mxu1  ;;  %v2132_v19 = vpop.permute.xlu0 %2131 }
 0x2a6   : > { %2278 = vst [vmem:[%s3485_s26 + $0x28] sm:$0xff] %v2214_v22  ;;  %v2216_v15 = vadd.f32 %v2067_v6, %v1679_v8 }
 0x2a7   : > { %2279 = vst [vmem:[%s3485_s26 + $0x30] sm:$0xff] %v2215_v18 }
 0x2a8   : > { %2280 = vst [vmem:[%s3485_s26 + $0x38] sm:$0xff] %v2216_v15 }
 0x2aa   : > { %v1683_v11 = vpop.f32.mrb[8].mxu1 }
 0x2ab   : > { %v2217_v41 = vadd.f32 %v2072_v9, %v1683_v11  ;;  %v1685_v14 = vpop.f32.mrb[9].mxu1 }
 0x2ac   : > { %v2218_v16 = vadd.f32 %v2072_v9, %v1685_v14  ;;  %v1687_v27 = vpop.f32.mrb[10].mxu1  ;;  %v2137_v9 = vpop.permute.xlu1 %2136 }
 0x2ad   : > { %2281 = vst [vmem:[%s3485_s26 + $0x40] sm:$0xff] %v2217_v41  ;;  %v2219_v24 = vadd.f32 %v2077_v30, %v1687_v27  ;;  %v1689_v17 = vpop.f32.mrb[11].mxu1  ;;  %v2142_v27 = vpop.permute.xlu0 %2141 }
 0x2ae   : > { %2282 = vst [vmem:[%s3485_s26 + $0x48] sm:$0xff] %v2218_v16  ;;  %v2220_v20 = vadd.f32 %v2077_v30, %v1689_v17 }
 0x2af   : > { %2283 = vst [vmem:[%s3485_s26 + $0x50] sm:$0xff] %v2219_v24 }
 0x2b0   : > { %2284 = vst [vmem:[%s3485_s26 + $0x58] sm:$0xff] %v2220_v20 }
 0x2b2   : > { %v1693_v21 = vpop.f32.mrb[12].mxu1 }
 0x2b3   : > { %v2221_v36 = vadd.f32 %v2082_v49, %v1693_v21  ;;  %v1695_v23 = vpop.f32.mrb[13].mxu1 }
 0x2b4   : > { %v2222_v39 = vadd.f32 %v2082_v49, %v1695_v23  ;;  %v1697_v33 = vpop.f32.mrb[14].mxu1  ;;  %v2147_v49 = vpop.permute.xlu1 %2146 }
 0x2b5   : > { %2285 = vst [vmem:[%s3485_s26 + $0x60] sm:$0xff] %v2221_v36  ;;  %v2223_v26 = vadd.f32 %v2087_v12, %v1697_v33  ;;  %v1699_v28 = vpop.f32.mrb[15].mxu1  ;;  %v2152_v33 = vpop.permute.xlu0 %2151 }
 0x2b6   : > { %2286 = vst [vmem:[%s3485_s26 + $0x68] sm:$0xff] %v2222_v39  ;;  %v2224_v29 = vadd.f32 %v2087_v12, %v1699_v28 }
 0x2b7   : > { %2287 = vst [vmem:[%s3485_s26 + $0x70] sm:$0xff] %v2223_v26 }
 0x2b8   : > { %2288 = vst [vmem:[%s3485_s26 + $0x78] sm:$0xff] %v2224_v29 }
 0x2ba   : > { %v1703_v31 = vpop.f32.mrb[16].mxu1 }
 0x2bb   : > { %v2225_v40 = vadd.f32 %v2092_v44, %v1703_v31  ;;  %v1705_v32 = vpop.f32.mrb[17].mxu1 }
 0x2bc   : > { %v2226_v35 = vadd.f32 %v2092_v44, %v1705_v32  ;;  %v1707_v50 = vpop.f32.mrb[18].mxu1  ;;  %v2157_v44 = vpop.permute.xlu1 %2156 }
 0x2bd   : > { %2289 = vst [vmem:[%s3485_s26 + $0x80] sm:$0xff] %v2225_v40  ;;  %v2227_v37 = vadd.f32 %v2097_v34, %v1707_v50  ;;  %v1709_v47 = vpop.f32.mrb[19].mxu1  ;;  %v2162_v50 = vpop.permute.xlu0 %2161 }
 0x2be   : > { %2290 = vst [vmem:[%s3485_s26 + $0x88] sm:$0xff] %v2226_v35  ;;  %v2228_v38 = vadd.f32 %v2097_v34, %v1709_v47 }
 0x2bf   : > { %2291 = vst [vmem:[%s3485_s26 + $0x90] sm:$0xff] %v2227_v37 }
 0x2c0   : > { %2292 = vst [vmem:[%s3485_s26 + $0x98] sm:$0xff] %v2228_v38 }
 0x2c2   : > { %v1713_v43 = vpop.f32.mrb[20].mxu1 }
 0x2c3   : > { %v2229_v60 = vadd.f32 %v2102_v42, %v1713_v43  ;;  %v1715_v45 = vpop.f32.mrb[21].mxu1 }
 0x2c4   : > { %v2230_v46 = vadd.f32 %v2102_v42, %v1715_v45  ;;  %v1717_v57 = vpop.f32.mrb[22].mxu1  ;;  %v2167_v42 = vpop.permute.xlu1 %2166 }
 0x2c5   : > { %2293 = vst [vmem:[%s3485_s26 + $0xa0] sm:$0xff] %v2229_v60  ;;  %v2231_v48 = vadd.f32 %v2107_v58, %v1717_v57  ;;  %v1719_v25 = vpop.f32.mrb[23].mxu1  ;;  %v2172_v57 = vpop.permute.xlu0 %2171 }
 0x2c6   : > { %2294 = vst [vmem:[%s3485_s26 + $0xa8] sm:$0xff] %v2230_v46  ;;  %v2232_v51 = vadd.f32 %v2107_v58, %v1719_v25 }
 0x2c7   : > { %2295 = vst [vmem:[%s3485_s26 + $0xb0] sm:$0xff] %v2231_v48 }
 0x2c8   : > { %2296 = vst [vmem:[%s3485_s26 + $0xb8] sm:$0xff] %v2232_v51 }
 0x2ca   : > { %v1723_v54 = vpop.f32.mrb[24].mxu1 }
 0x2cb   : > { %v2233_v52 = vadd.f32 %v2112_v1, %v1723_v54  ;;  %v1725_v62 = vpop.f32.mrb[25].mxu1 }
 0x2cc   : > { %v2234_v55 = vadd.f32 %v2112_v1, %v1725_v62  ;;  %v1727_v56 = vpop.f32.mrb[26].mxu1  ;;  %v2177_v1 = vpop.permute.xlu1 %2176 }
 0x2cd   : > { %2297 = vst [vmem:[%s3485_s26 + $0xc0] sm:$0xff] %v2233_v52  ;;  %v2235_v7 = vadd.f32 %v2117_v53, %v1727_v56  ;;  %v1729_v59 = vpop.f32.mrb[27].mxu1  ;;  %v2182_v56 = vpop.permute.xlu0 %2181 }
 0x2ce   : > { %2298 = vst [vmem:[%s3485_s26 + $0xc8] sm:$0xff] %v2234_v55  ;;  %v2236_v4 = vadd.f32 %v2117_v53, %v1729_v59 }
 0x2cf   : > { %2299 = vst [vmem:[%s3485_s26 + $0xd0] sm:$0xff] %v2235_v7 }
 0x2d0   : > { %2300 = vst [vmem:[%s3485_s26 + $0xd8] sm:$0xff] %v2236_v4 }
 0x2d2   : > { %v1733_v63 = vpop.f32.mrb[28].mxu1 }
 0x2d3   : > { %v2237_v0 = vadd.f32 %v2122_v61, %v1733_v63  ;;  %v1735_v13 = vpop.f32.mrb[29].mxu1 }
 0x2d4   : > { %v2238_v10 = vadd.f32 %v2122_v61, %v1735_v13  ;;  %v1737_v3 = vpop.f32.mrb[30].mxu1  ;;  %v2187_v61 = vpop.permute.xlu1 %2186 }
 0x2d5   : > { %2301 = vst [vmem:[%s3485_s26 + $0xe0] sm:$0xff] %v2237_v0  ;;  %v2239_v5 = vadd.f32 %v2127_v2, %v1737_v3  ;;  %v1739_v6 = vpop.f32.mrb[31].mxu1  ;;  %v2192_v3 = vpop.permute.xlu0 %2191 }
 0x2d6   : > { %2302 = vst [vmem:[%s3485_s26 + $0xe8] sm:$0xff] %v2238_v10  ;;  %v2240_v22 = vadd.f32 %v2127_v2, %v1739_v6 }
 0x2d7   : > { %2303 = vst [vmem:[%s3485_s26 + $0xf0] sm:$0xff] %v2239_v5 }
 0x2d8   : > { %2304 = vst [vmem:[%s3485_s26 + $0xf8] sm:$0xff] %v2240_v22 }
 0x2da   : > { %v1743_v18 = vpop.f32.mrb[32].mxu1 }
 0x2db   : > { %v2241_v8 = vadd.f32 %v2132_v19, %v1743_v18  ;;  %v1745_v15 = vpop.f32.mrb[33].mxu1 }
 0x2dc   : > { %v2242_v11 = vadd.f32 %v2132_v19, %v1745_v15  ;;  %v1747_v41 = vpop.f32.mrb[34].mxu1  ;;  %v2197_v19 = vpop.permute.xlu1 %2196 }
 0x2dd   : > { %2305 = vst [vmem:[%s3485_s26 + $0x100] sm:$0xff] %v2241_v8  ;;  %v2243_v14 = vadd.f32 %v2137_v9, %v1747_v41  ;;  %v1749_v30 = vpop.f32.mrb[35].mxu1  ;;  %v2202_v41 = vpop.permute.xlu0 %2201 }
 0x2de   : > { %2306 = vst [vmem:[%s3485_s26 + $0x108] sm:$0xff] %v2242_v11  ;;  %v2244_v16 = vadd.f32 %v2137_v9, %v1749_v30 }
 0x2df   : > { %2307 = vst [vmem:[%s3485_s26 + $0x110] sm:$0xff] %v2243_v14 }
 0x2e0   : > { %2308 = vst [vmem:[%s3485_s26 + $0x118] sm:$0xff] %v2244_v16 }
 0x2e2   : > { %v1753_v24 = vpop.f32.mrb[36].mxu1 }
 0x2e3   : > { %v2245_v17 = vadd.f32 %v2142_v27, %v1753_v24  ;;  %v1755_v20 = vpop.f32.mrb[37].mxu1 }
 0x2e4   : > { %v2246_v21 = vadd.f32 %v2142_v27, %v1755_v20  ;;  %v1757_v36 = vpop.f32.mrb[38].mxu1  ;;  %v2207_v27 = vpop.permute.xlu1 %2206 }
 0x2e5   : > { %2309 = vst [vmem:[%s3485_s26 + $0x120] sm:$0xff] %v2245_v17  ;;  %v2247_v23 = vadd.f32 %v2147_v49, %v1757_v36  ;;  %v1759_v12 = vpop.f32.mrb[39].mxu1 }
 0x2e6   : > { %2310 = vst [vmem:[%s3485_s26 + $0x128] sm:$0xff] %v2246_v21  ;;  %v2248_v39 = vadd.f32 %v2147_v49, %v1759_v12 }
 0x2e7   : > { %2311 = vst [vmem:[%s3485_s26 + $0x130] sm:$0xff] %v2247_v23 }
 0x2e8   : > { %2312 = vst [vmem:[%s3485_s26 + $0x138] sm:$0xff] %v2248_v39 }
 0x2ea   : > { %v1763_v26 = vpop.f32.mrb[40].mxu1 }
 0x2eb   : > { %v2249_v28 = vadd.f32 %v2152_v33, %v1763_v26  ;;  %v1765_v29 = vpop.f32.mrb[41].mxu1 }
 0x2ec   : > { %v2250_v31 = vadd.f32 %v2152_v33, %v1765_v29  ;;  %v1767_v40 = vpop.f32.mrb[42].mxu1 }
 0x2ed   : > { %2313 = vst [vmem:[%s3485_s26 + $0x140] sm:$0xff] %v2249_v28  ;;  %v2251_v32 = vadd.f32 %v2157_v44, %v1767_v40  ;;  %v1769_v34 = vpop.f32.mrb[43].mxu1 }
 0x2ee   : > { %2314 = vst [vmem:[%s3485_s26 + $0x148] sm:$0xff] %v2250_v31  ;;  %v2252_v35 = vadd.f32 %v2157_v44, %v1769_v34 }
 0x2ef   : > { %2315 = vst [vmem:[%s3485_s26 + $0x150] sm:$0xff] %v2251_v32 }
 0x2f0   : > { %2316 = vst [vmem:[%s3485_s26 + $0x158] sm:$0xff] %v2252_v35 }
 0x2f2   : > { %v1773_v37 = vpop.f32.mrb[44].mxu1 }
 0x2f3   : > { %v2253_v47 = vadd.f32 %v2162_v50, %v1773_v37  ;;  %v1775_v38 = vpop.f32.mrb[45].mxu1 }
 0x2f4   : > { %v2254_v43 = vadd.f32 %v2162_v50, %v1775_v38  ;;  %v1777_v60 = vpop.f32.mrb[46].mxu1 }
 0x2f5   : > { %2317 = vst [vmem:[%s3485_s26 + $0x160] sm:$0xff] %v2253_v47  ;;  %v2255_v45 = vadd.f32 %v2167_v42, %v1777_v60  ;;  %v1779_v58 = vpop.f32.mrb[47].mxu1 }
 0x2f6   : > { %2318 = vst [vmem:[%s3485_s26 + $0x168] sm:$0xff] %v2254_v43  ;;  %v2256_v46 = vadd.f32 %v2167_v42, %v1779_v58 }
 0x2f7   : > { %2319 = vst [vmem:[%s3485_s26 + $0x170] sm:$0xff] %v2255_v45 }
 0x2f8   : > { %2320 = vst [vmem:[%s3485_s26 + $0x178] sm:$0xff] %v2256_v46 }
 0x2fa   : > { %v1783_v48 = vpop.f32.mrb[48].mxu1 }
 0x2fb   : > { %v2257_v25 = vadd.f32 %v2172_v57, %v1783_v48  ;;  %v1785_v51 = vpop.f32.mrb[49].mxu1 }
 0x2fc   : > { %v2258_v54 = vadd.f32 %v2172_v57, %v1785_v51  ;;  %v1787_v52 = vpop.f32.mrb[50].mxu1 }
 0x2fd   : > { %2321 = vst [vmem:[%s3485_s26 + $0x180] sm:$0xff] %v2257_v25  ;;  %v2259_v62 = vadd.f32 %v2177_v1, %v1787_v52  ;;  %v1789_v53 = vpop.f32.mrb[51].mxu1 }
 0x2fe   : > { %2322 = vst [vmem:[%s3485_s26 + $0x188] sm:$0xff] %v2258_v54  ;;  %v2260_v55 = vadd.f32 %v2177_v1, %v1789_v53 }
 0x2ff   : > { %2323 = vst [vmem:[%s3485_s26 + $0x190] sm:$0xff] %v2259_v62 }
 0x300   : > { %2324 = vst [vmem:[%s3485_s26 + $0x198] sm:$0xff] %v2260_v55 }
 0x302   : > { %v1793_v7 = vpop.f32.mrb[52].mxu1 }
 0x303   : > { %v2261_v59 = vadd.f32 %v2182_v56, %v1793_v7  ;;  %v1795_v4 = vpop.f32.mrb[53].mxu1 }
 0x304   : > { %v2262_v63 = vadd.f32 %v2182_v56, %v1795_v4  ;;  %v1797_v0 = vpop.f32.mrb[54].mxu1 }
 0x305   : > { %2325 = vst [vmem:[%s3485_s26 + $0x1a0] sm:$0xff] %v2261_v59  ;;  %v2263_v13 = vadd.f32 %v2187_v61, %v1797_v0  ;;  %v1799_v2 = vpop.f32.mrb[55].mxu1 }
 0x306   : > { %2326 = vst [vmem:[%s3485_s26 + $0x1a8] sm:$0xff] %v2262_v63  ;;  %v2264_v10 = vadd.f32 %v2187_v61, %v1799_v2 }
 0x307   : > { %2327 = vst [vmem:[%s3485_s26 + $0x1b0] sm:$0xff] %v2263_v13 }
 0x308   : > { %2328 = vst [vmem:[%s3485_s26 + $0x1b8] sm:$0xff] %v2264_v10 }
 0x30a   : > { %v1803_v5 = vpop.f32.mrb[56].mxu1 }
 0x30b   : > { %v2265_v6 = vadd.f32 %v2192_v3, %v1803_v5  ;;  %v1805_v22 = vpop.f32.mrb[57].mxu1 }
 0x30c   : > { %v2266_v18 = vadd.f32 %v2192_v3, %v1805_v22  ;;  %v1807_v8 = vpop.f32.mrb[58].mxu1 }
 0x30d   : > { %2329 = vst [vmem:[%s3485_s26 + $0x1c0] sm:$0xff] %v2265_v6  ;;  %v2267_v15 = vadd.f32 %v2197_v19, %v1807_v8  ;;  %v1809_v9 = vpop.f32.mrb[59].mxu1 }
 0x30e   : > { %2330 = vst [vmem:[%s3485_s26 + $0x1c8] sm:$0xff] %v2266_v18  ;;  %v2268_v11 = vadd.f32 %v2197_v19, %v1809_v9 }
 0x30f   : > { %2331 = vst [vmem:[%s3485_s26 + $0x1d0] sm:$0xff] %v2267_v15 }
 0x310   : > { %2332 = vst [vmem:[%s3485_s26 + $0x1d8] sm:$0xff] %v2268_v11 }
 0x312   : > { %v1813_v14 = vpop.f32.mrb[60].mxu1 }
 0x313   : > { %v2269_v30 = vadd.f32 %v2202_v41, %v1813_v14  ;;  %v1815_v16 = vpop.f32.mrb[61].mxu1 }
 0x314   : > { %v2270_v24 = vadd.f32 %v2202_v41, %v1815_v16  ;;  %v1817_v17 = vpop.f32.mrb[62].mxu1 }
 0x315   : > { %2333 = vst [vmem:[%s3485_s26 + $0x1e0] sm:$0xff] %v2269_v30  ;;  %v2271_v20 = vadd.f32 %v2207_v27, %v1817_v17  ;;  %v1819_v49 = vpop.f32.mrb[63].mxu1 }
 0x316   : > { %2334 = vst [vmem:[%s3485_s26 + $0x1e8] sm:$0xff] %v2270_v24  ;;  %v2272_v21 = vadd.f32 %v2207_v27, %v1819_v49 }
 0x317   : > { %2335 = vst [vmem:[%s3485_s26 + $0x1f0] sm:$0xff] %v2271_v20 }
 0x318   : > { %2336 = vst [vmem:[%s3485_s26 + $0x1f8] sm:$0xff] %v2272_v21 }
 0x319 PF: > { %s15_s20 = sadd.s32 1, %s2761_s20   ;;  %s3566_s18 = smov %s2757_s19 }
 0x31a   : > { %p12_p5 = scmp.ge.s32.totalorder %s15_s20, 4   ;;  %s3567_s19 = smov %s3569_s21 }
 0x31c   :  { %14 = sbr.rel (!%p12_p5) target bundleno = 2 (0x2), region = 87 }

</bundles_post_ra>
